<compile_context>
chip_gen: v7x
topology: tpu7x:2x2x1
jax: 0.10.0
libtpu: 0.0.40
codegen_flags: <defaults>
</compile_context>

<pallas_src>
import functools
import math

import jax
import jax.numpy as jnp
from jax.experimental import pallas as pl
from jax.experimental.pallas import tpu as pltpu


_STRIPE = 128          # lane stripe / padded minor width
_N_VEC_PER_LAYER = 9   # bq, bk, bv, bo, b2, ln1g, ln1b, ln2g, ln2b


# ----------------------------- shared math ---------------------------------

def _layernorm(x, g, b, eps=1e-5):
    mu = jnp.mean(x, axis=-1, keepdims=True)
    var = jnp.mean((x - mu) ** 2, axis=-1, keepdims=True)
    return (x - mu) * jax.lax.rsqrt(var + eps) * g + b


# ------------------------- f32 vec/tail slab layout -------------------------

_TAIL_BIAS_ORDER = ("bf", "bl1", "bl2", "bl3", "wp")


def _vec_layout(d, n_layers=2):
    """Row layout of the f32 (rows, 128) slab holding all small vectors and
    the tail (fc / MLP / pair-attention) parameters.  Segment starts are
    8-sublane aligned."""
    def up8(r):
        return ((r + 7) // 8) * 8

    row = n_layers * _N_VEC_PER_LAYER
    layout = {}
    for name in _TAIL_BIAS_ORDER:          # one row each
        layout[name] = (row, 1)
        row += 1
    row = up8(row)
    layout["wf"] = (row, d);        row = up8(row + d)
    layout["wl1"] = (row, d);       row = up8(row + d)
    layout["wl2"] = (row, _STRIPE); row = up8(row + _STRIPE)
    layout["wl3"] = (row, _STRIPE); row = up8(row + _STRIPE)
    return layout, up8(row)


# ------------------------------- kernel -------------------------------------

def _srpnet_kernel(x_ref, attnw_ref, ffnw_ref, vec_ref, out_ref, *,
                   d_model, n_layers):
    d = d_model
    S = _STRIPE
    scale = 1.0 / math.sqrt(d)           # nhead = 1 -> head_dim == d_model
    cdt = attnw_ref.dtype                # bf16 compute dtype for MXU operands

    x = x_ref[...]                       # (N, D) f32
    h = x

    for L in range(n_layers):            # Python-unrolled: grid collapsed
        ar0 = L * d                      # attn slab row base
        fr0 = L * 2 * d                  # ffn slab row base (W1 | W2^T)
        vr0 = L * _N_VEC_PER_LAYER       # vec slab row base

        wqkv = attnw_ref[ar0:ar0 + d, 0:3 * S]        # (D, 384) bf16, striped
        woT = attnw_ref[ar0:ar0 + d, 3 * S:4 * S]     # (D, 128) bf16 = Wo^T pad

        # Fused QKV projection; each segment sits in its own 128-lane stripe.
        qkv = jnp.dot(h.astype(cdt), wqkv,
                      preferred_element_type=jnp.float32)            # (N, 384)
        q = (qkv[:, 0:S] + vec_ref[vr0 + 0:vr0 + 1, :]).astype(cdt)
        k = (qkv[:, S:2 * S] + vec_ref[vr0 + 1:vr0 + 2, :]).astype(cdt)
        v = (qkv[:, 2 * S:3 * S] + vec_ref[vr0 + 2:vr0 + 3, :]).astype(cdt)

        # scores = q @ k^T without an explicit transpose (contract last dims).
        scores = jax.lax.dot_general(
            q, k, (((1,), (1,)), ((), ())),
            preferred_element_type=jnp.float32) * scale               # (N, N)
        m = jnp.max(scores, axis=-1, keepdims=True)
        e = jnp.exp(scores - m)
        attn = e * pl.reciprocal(jnp.sum(e, axis=-1, keepdims=True),
                                 approx=True)
        ctx = jnp.dot(attn.astype(cdt), v,
                      preferred_element_type=jnp.float32)             # (N, 128)
        # sa = ctx @ Wo, consuming Wo^T lane-dense (contract last dims).
        sa = jax.lax.dot_general(
            ctx.astype(cdt), woT, (((1,), (1,)), ((), ())),
            preferred_element_type=jnp.float32)                       # (N, D)
        sa = sa + vec_ref[vr0 + 3:vr0 + 4, 0:d]                       # + bo
        h = _layernorm(h + sa,
                       vec_ref[vr0 + 5:vr0 + 6, 0:d],                 # ln1g
                       vec_ref[vr0 + 6:vr0 + 7, 0:d])                 # ln1b

        w1 = ffnw_ref[fr0:fr0 + d, :]                 # (D, 2048) bf16
        w2T = ffnw_ref[fr0 + d:fr0 + 2 * d, :]        # (D, 2048) bf16 = W2^T
        b1r = 2 * d * n_layers + L
        b1 = ffnw_ref[b1r:b1r + 1, :].astype(jnp.float32)             # (1, 2048)

        ff = jnp.dot(h.astype(cdt), w1,
                     preferred_element_type=jnp.float32) + b1
        ff = jnp.maximum(ff, 0.0)
        # ff @ W2 with W2 stored lane-dense as W2^T (contract the 2048 dims).
        ff2 = jax.lax.dot_general(
            ff.astype(cdt), w2T, (((1,), (1,)), ((), ())),
            preferred_element_type=jnp.float32)                       # (N, D)
        ff2 = ff2 + vec_ref[vr0 + 4:vr0 + 5, 0:d]                     # + b2
        h = _layernorm(h + ff2,
                       vec_ref[vr0 + 7:vr0 + 8, 0:d],                 # ln2g
                       vec_ref[vr0 + 8:vr0 + 9, 0:d])                 # ln2b

    # ------------------------------ tail ------------------------------------
    lay, _ = _vec_layout(d, n_layers)

    def seg(name):
        r0, nr = lay[name]
        return vec_ref[r0:r0 + nr, :]

    # t = relu(fc(encoder_out))  -- all tail weights lane-padded to 128
    t = jnp.maximum(
        jnp.dot(h, seg("wf"), preferred_element_type=jnp.float32) + seg("bf"),
        0.0)                                                          # (N, 128)
    # l = Sequential(Linear+BN+ReLU, Linear+BN+ReLU, Linear+ReLU)  (BN folded)
    l = jnp.maximum(
        jnp.dot(x, seg("wl1"), preferred_element_type=jnp.float32) + seg("bl1"),
        0.0)
    l = jnp.maximum(
        jnp.dot(l, seg("wl2"), preferred_element_type=jnp.float32) + seg("bl2"),
        0.0)
    l = jnp.maximum(
        jnp.dot(l, seg("wl3"), preferred_element_type=jnp.float32) + seg("bl3"),
        0.0)
    # Pair attention over the stacked {t, l}: 20->1 projection as a VPU/XLU
    # row reduction (degenerate MXU shape); softmax over the size-2 stack dim.
    wp = seg("wp")
    wt = jnp.sum(t * wp, axis=-1, keepdims=True)                      # (N, 1)
    wl = jnp.sum(l * wp, axis=-1, keepdims=True)                      # (N, 1)
    m = jnp.maximum(wt, wl)
    et = jnp.exp(wt - m)
    el = jnp.exp(wl - m)
    inv = pl.reciprocal(et + el, approx=True)
    out_ref[...] = (et * inv) * t + (el * inv) * l                    # (N, 128)


def srpnet_forward(x, inputs, n_layers=2):
    attnw, ffnw, vec = inputs
    n, d = x.shape
    kernel = functools.partial(_srpnet_kernel, d_model=d, n_layers=n_layers)
    out_pad = pl.pallas_call(
        kernel,
        out_shape=jax.ShapeDtypeStruct((n, _STRIPE), jnp.float32),
        grid_spec=pltpu.PrefetchScalarGridSpec(
            num_scalar_prefetch=0,
            grid=(1,),
            in_specs=[
                pl.BlockSpec((n, d), lambda i: (0, 0)),            # x
                pl.BlockSpec(attnw.shape, lambda i: (0, 0)),       # attn slab
                pl.BlockSpec(ffnw.shape, lambda i: (0, 0)),        # ffn slab
                pl.BlockSpec(vec.shape, lambda i: (0, 0)),         # vec/tail slab
            ],
            out_specs=pl.BlockSpec((n, _STRIPE), lambda i: (0, 0)),
        ),
        compiler_params=pltpu.CompilerParams(
            dimension_semantics=("arbitrary",)),
    )(x, attnw, ffnw, vec)
    return out_pad[:, :20]


# --------------------------- parameter plumbing -----------------------------

def _fold_bn(w_t, b, gamma, beta, mean, var, eps=1e-5):
    """Fold eval-mode BatchNorm1d into the preceding Linear (w_t is (in, out))."""
    s = gamma / jnp.sqrt(var + eps)
    return w_t * s[None, :], (b - mean) * s + beta


def make_raw_params(key, d_model, dim_ff=2048):
    """Deterministic synthetic parameters (same shapes as the PyTorch module)."""
    ks = iter(jax.random.split(key, 64))

    def nrm(shape, s=0.05):
        return jax.random.normal(next(ks), shape, dtype=jnp.float32) * s

    raw = dict(
        wq=nrm((2, d_model, d_model)), wk=nrm((2, d_model, d_model)),
        wv=nrm((2, d_model, d_model)),
        bq=nrm((2, 1, d_model), 0.02), bk=nrm((2, 1, d_model), 0.02),
        bv=nrm((2, 1, d_model), 0.02),
        wo=nrm((2, d_model, d_model)), bo=nrm((2, 1, d_model), 0.02),
        w1=nrm((2, d_model, dim_ff)), b1=nrm((2, 1, dim_ff), 0.02),
        w2=nrm((2, dim_ff, d_model), 0.02), b2=nrm((2, 1, d_model), 0.02),
        ln1g=1.0 + nrm((2, 1, d_model)), ln1b=nrm((2, 1, d_model), 0.02),
        ln2g=1.0 + nrm((2, 1, d_model)), ln2b=nrm((2, 1, d_model), 0.02),
    )
    # fc: Linear(D, 20)
    raw["wf"] = nrm((d_model, 20))
    raw["bf"] = nrm((1, 20), 0.02)

    # layer: Linear+BN+ReLU blocks (eval-mode BN folded into the Linear)
    def lin_bn(din, dout):
        w = nrm((din, dout)); b = nrm((dout,), 0.02)
        g = 1.0 + nrm((dout,), 0.1); be = nrm((dout,), 0.1)
        mu = nrm((dout,), 0.1); var = 1.0 + jnp.abs(nrm((dout,), 0.2))
        wf_, bf_ = _fold_bn(w, b, g, be, mu, var)
        return wf_, bf_.reshape(1, dout)

    raw["wl1"], raw["bl1"] = lin_bn(d_model, 100)
    raw["wl2"], raw["bl2"] = lin_bn(100, 50)
    raw["wl3"] = nrm((50, 20)); raw["bl3"] = nrm((1, 20), 0.02)

    # Attention.project: Linear(20, 1, bias=False), stored as a (1, 20) row.
    raw["wp"] = nrm((20, 1), 0.2).T

    # Note: self.fnn = Linear(20, num_classes) exists in __init__ but is unused
    # in forward(), so it is intentionally not materialized here.
    return raw


def prepare_inputs(raw, d, n_layers=2):
    """Pack / pad / cast the raw params into the 3 kernel weight operands."""
    assert d <= _STRIPE
    S = _STRIPE
    dim_ff = raw["w1"].shape[-1]

    # (1) bf16 attention slab: per layer [Wq | Wk | Wv | Wo^T], 128-lane stripes.
    attnw = jnp.zeros((n_layers * d, 4 * S), jnp.float32)
    for L in range(n_layers):
        r = L * d
        attnw = attnw.at[r:r + d, 0 * S:0 * S + d].set(raw["wq"][L])
        attnw = attnw.at[r:r + d, 1 * S:1 * S + d].set(raw["wk"][L])
        attnw = attnw.at[r:r + d, 2 * S:2 * S + d].set(raw["wv"][L])
        attnw = attnw.at[r:r + d, 3 * S:3 * S + d].set(raw["wo"][L].T)
    attnw = attnw.astype(jnp.bfloat16)

    # (2) bf16 FFN slab (lane-dense): per layer W1 rows then W2^T rows; b1 rows
    # appended at the end; padded to a multiple of 16 sublanes.
    rows = 2 * d * n_layers + n_layers
    rows_pad = ((rows + 15) // 16) * 16
    ffnw = jnp.zeros((rows_pad, dim_ff), jnp.float32)
    for L in range(n_layers):
        r = 2 * d * L
        ffnw = ffnw.at[r:r + d, :].set(raw["w1"][L])
        ffnw = ffnw.at[r + d:r + 2 * d, :].set(raw["w2"][L].T)
        ffnw = ffnw.at[2 * d * n_layers + L, :].set(raw["b1"][L, 0])
    ffnw = ffnw.astype(jnp.bfloat16)

    # (3) f32 vec/tail slab, width 128.
    lay, total_rows = _vec_layout(d, n_layers)
    vec = jnp.zeros((total_rows, S), jnp.float32)
    per_layer = ("bq", "bk", "bv", "bo", "b2", "ln1g", "ln1b", "ln2g", "ln2b")
    for L in range(n_layers):
        for i, name in enumerate(per_layer):
            vec = vec.at[L * _N_VEC_PER_LAYER + i, 0:d].set(raw[name][L, 0])
    for name in ("bf", "bl1", "bl2", "bl3", "wp", "wf", "wl1", "wl2", "wl3"):
        arr = raw[name]
        r0, _ = lay[name]
        rr, cc = arr.shape
        vec = vec.at[r0:r0 + rr, 0:cc].set(arr)
    return attnw, ffnw, vec


# ------------------------------- reference ----------------------------------

def srpnet_reference(x, raw, n_layers=2):
    """Pure-JAX float32 reference of the PyTorch forward (eval mode, BN folded)."""
    d = x.shape[1]
    scale = 1.0 / math.sqrt(d)
    h = x
    for L in range(n_layers):
        q = h @ raw["wq"][L] + raw["bq"][L]
        k = h @ raw["wk"][L] + raw["bk"][L]
        v = h @ raw["wv"][L] + raw["bv"][L]
        s = (q @ k.T) * scale
        s = s - jnp.max(s, axis=-1, keepdims=True)
        e = jnp.exp(s)
        a = e / jnp.sum(e, axis=-1, keepdims=True)
        sa = (a @ v) @ raw["wo"][L] + raw["bo"][L]
        h = _layernorm(h + sa, raw["ln1g"][L], raw["ln1b"][L])
        ff = jnp.maximum(h @ raw["w1"][L] + raw["b1"][L], 0.0)
        ff = ff @ raw["w2"][L] + raw["b2"][L]
        h = _layernorm(h + ff, raw["ln2g"][L], raw["ln2b"][L])
    t = jnp.maximum(h @ raw["wf"] + raw["bf"], 0.0)
    l = jnp.maximum(x @ raw["wl1"] + raw["bl1"], 0.0)
    l = jnp.maximum(l @ raw["wl2"] + raw["bl2"], 0.0)
    l = jnp.maximum(l @ raw["wl3"] + raw["bl3"], 0.0)
    wt = jnp.sum(t * raw["wp"], axis=-1, keepdims=True)
    wl = jnp.sum(l * raw["wp"], axis=-1, keepdims=True)
    m = jnp.maximum(wt, wl)
    et, el = jnp.exp(wt - m), jnp.exp(wl - m)
    den = et + el
    return (et / den) * t + (el / den) * l


if __name__ == "__main__":
    N, D = 8, 32          # batch (= transformer sequence length), input_size
    key = jax.random.PRNGKey(0)
    kx, kp = jax.random.split(key)
    x = jax.random.normal(kx, (N, D), dtype=jnp.float32)

    raw = make_raw_params(kp, D)
    inputs = prepare_inputs(raw, D)

    out = jax.jit(srpnet_forward)(x, inputs)
    out = jax.block_until_ready(out)

    ref = srpnet_reference(x, raw)
    assert out.shape == (N, 20), out.shape
    if not jnp.allclose(out, ref, rtol=2e-2, atol=2e-2):
        raise AssertionError("Pallas kernel does not match f32 JAX reference")
    print("KERNEL_OK")
</pallas_src>

<mosaic_0001>
module attributes {stable_mosaic.version = 11 : i64} {
  func.func @_srpnet_kernel(%arg0: i32, %arg1: memref<8x32xf32, #tpu.memory_space<vmem>>, %arg2: memref<64x512xbf16, #tpu.memory_space<vmem>>, %arg3: memref<144x2048xbf16, #tpu.memory_space<vmem>>, %arg4: memref<344x128xf32, #tpu.memory_space<vmem>>, %arg5: memref<8x128xf32, #tpu.memory_space<vmem>>) attributes {dimension_semantics = [#tpu.dimension_semantics<arbitrary>], iteration_bounds = array<i64: 1>, scalar_prefetch = 0 : i64, scratch_operands = 0 : i64, tpu.core_type = #tpu.core_type<tc>, window_params = [{pipeline_mode = #tpu.pipeline_mode<synchronous>, transform_indices = @transform_0, window_bounds = array<i64: 8, 32>}, {pipeline_mode = #tpu.pipeline_mode<synchronous>, transform_indices = @transform_1, window_bounds = array<i64: 64, 512>}, {pipeline_mode = #tpu.pipeline_mode<synchronous>, transform_indices = @transform_2, window_bounds = array<i64: 144, 2048>}, {pipeline_mode = #tpu.pipeline_mode<synchronous>, transform_indices = @transform_3, window_bounds = array<i64: 344, 128>}, {pipeline_mode = #tpu.pipeline_mode<synchronous>, transform_indices = @transform_4, window_bounds = array<i64: 8, 128>}]} {
    %c0 = arith.constant 0 : index
    %c0_0 = arith.constant 0 : index
    %0 = vector.load %arg1[%c0, %c0_0] : memref<8x32xf32, #tpu.memory_space<vmem>>, vector<8x32xf32>
    %c0_1 = arith.constant 0 : index
    %c0_2 = arith.constant 0 : index
    %1 = vector.load %arg2[%c0_1, %c0_2] : memref<64x512xbf16, #tpu.memory_space<vmem>>, vector<32x384xbf16>
    %c0_3 = arith.constant 0 : index
    %c384 = arith.constant 384 : index
    %2 = vector.load %arg2[%c0_3, %c384] : memref<64x512xbf16, #tpu.memory_space<vmem>>, vector<32x128xbf16>
    %3 = arith.truncf %0 : vector<8x32xf32> to vector<8x32xbf16>
    %cst = arith.constant dense<0.000000e+00> : vector<8x384xf32>
    %4 = tpu.matmul %3, %1, %cst {dimension_numbers = #tpu.dot_dimension_numbers<[1], [0], [0], [1], [0, 0, 1, 1], [], []>} : vector<8x32xbf16>, vector<32x384xbf16>, vector<8x384xf32> -> vector<8x384xf32>
    %5 = vector.extract_strided_slice %4 {offsets = [0, 0], sizes = [8, 128], strides = [1, 1]} : vector<8x384xf32> to vector<8x128xf32>
    %c0_4 = arith.constant 0 : index
    %c0_5 = arith.constant 0 : index
    %6 = vector.load %arg4[%c0_4, %c0_5] : memref<344x128xf32, #tpu.memory_space<vmem>>, vector<1x128xf32>
    %7 = vector.broadcast %6 : vector<1x128xf32> to vector<8x128xf32>
    %8 = arith.addf %5, %7 : vector<8x128xf32>
    %9 = arith.truncf %8 : vector<8x128xf32> to vector<8x128xbf16>
    %10 = vector.extract_strided_slice %4 {offsets = [0, 128], sizes = [8, 128], strides = [1, 1]} : vector<8x384xf32> to vector<8x128xf32>
    %c1 = arith.constant 1 : index
    %c0_6 = arith.constant 0 : index
    %11 = vector.load %arg4[%c1, %c0_6] : memref<344x128xf32, #tpu.memory_space<vmem>>, vector<1x128xf32>
    %12 = vector.broadcast %11 : vector<1x128xf32> to vector<8x128xf32>
    %13 = arith.addf %10, %12 : vector<8x128xf32>
    %14 = arith.truncf %13 : vector<8x128xf32> to vector<8x128xbf16>
    %15 = vector.extract_strided_slice %4 {offsets = [0, 256], sizes = [8, 128], strides = [1, 1]} : vector<8x384xf32> to vector<8x128xf32>
    %c2 = arith.constant 2 : index
    %c0_7 = arith.constant 0 : index
    %16 = vector.load %arg4[%c2, %c0_7] : memref<344x128xf32, #tpu.memory_space<vmem>>, vector<1x128xf32>
    %17 = vector.broadcast %16 : vector<1x128xf32> to vector<8x128xf32>
    %18 = arith.addf %15, %17 : vector<8x128xf32>
    %19 = arith.truncf %18 : vector<8x128xf32> to vector<8x128xbf16>
    %cst_8 = arith.constant dense<0.000000e+00> : vector<8x8xf32>
    %20 = tpu.matmul %9, %14, %cst_8 {dimension_numbers = #tpu.dot_dimension_numbers<[1], [1], [0], [0], [0, 0, 1, 0], [], []>} : vector<8x128xbf16>, vector<8x128xbf16>, vector<8x8xf32> -> vector<8x8xf32>
    %cst_9 = arith.constant 0.176776692 : f32
    %21 = vector.broadcast %cst_9 : f32 to vector<8x8xf32>
    %22 = arith.mulf %20, %21 : vector<8x8xf32>
    %cst_10 = arith.constant dense<0xFF800000> : vector<8xf32>
    %23 = vector.multi_reduction <maximumf>, %22, %cst_10 [1] : vector<8x8xf32> to vector<8xf32>
    %24 = vector.shape_cast %23 : vector<8xf32> to vector<8x1xf32>
    %25 = vector.broadcast %24 : vector<8x1xf32> to vector<8x8xf32>
    %26 = arith.subf %22, %25 : vector<8x8xf32>
    %27 = math.exp %26 : vector<8x8xf32>
    %cst_11 = arith.constant dense<0.000000e+00> : vector<8xf32>
    %28 = vector.multi_reduction <add>, %27, %cst_11 [1] : vector<8x8xf32> to vector<8xf32>
    %29 = vector.shape_cast %28 : vector<8xf32> to vector<8x1xf32>
    %30 = tpu.reciprocal %29 {approx = true} : vector<8x1xf32> -> vector<8x1xf32>
    %31 = vector.broadcast %30 : vector<8x1xf32> to vector<8x8xf32>
    %32 = arith.mulf %27, %31 : vector<8x8xf32>
    %33 = arith.truncf %32 : vector<8x8xf32> to vector<8x8xbf16>
    %cst_12 = arith.constant dense<0.000000e+00> : vector<8x128xf32>
    %34 = tpu.matmul %33, %19, %cst_12 {dimension_numbers = #tpu.dot_dimension_numbers<[1], [0], [0], [1], [0, 0, 1, 1], [], []>} : vector<8x8xbf16>, vector<8x128xbf16>, vector<8x128xf32> -> vector<8x128xf32>
    %35 = arith.truncf %34 : vector<8x128xf32> to vector<8x128xbf16>
    %cst_13 = arith.constant dense<0.000000e+00> : vector<8x32xf32>
    %36 = tpu.matmul %35, %2, %cst_13 {dimension_numbers = #tpu.dot_dimension_numbers<[1], [1], [0], [0], [0, 0, 1, 0], [], []>} : vector<8x128xbf16>, vector<32x128xbf16>, vector<8x32xf32> -> vector<8x32xf32>
    %c3 = arith.constant 3 : index
    %c0_14 = arith.constant 0 : index
    %37 = vector.load %arg4[%c3, %c0_14] : memref<344x128xf32, #tpu.memory_space<vmem>>, vector<1x32xf32>
    %38 = vector.broadcast %37 : vector<1x32xf32> to vector<8x32xf32>
    %39 = arith.addf %36, %38 : vector<8x32xf32>
    %40 = arith.addf %0, %39 : vector<8x32xf32>
    %c5 = arith.constant 5 : index
    %c0_15 = arith.constant 0 : index
    %41 = vector.load %arg4[%c5, %c0_15] : memref<344x128xf32, #tpu.memory_space<vmem>>, vector<1x32xf32>
    %c6 = arith.constant 6 : index
    %c0_16 = arith.constant 0 : index
    %42 = vector.load %arg4[%c6, %c0_16] : memref<344x128xf32, #tpu.memory_space<vmem>>, vector<1x32xf32>
    %cst_17 = arith.constant dense<0.000000e+00> : vector<8xf32>
    %43 = vector.multi_reduction <add>, %40, %cst_17 [1] : vector<8x32xf32> to vector<8xf32>
    %44 = vector.shape_cast %43 : vector<8xf32> to vector<8x1xf32>
    %cst_18 = arith.constant 3.200000e+01 : f32
    %45 = vector.broadcast %cst_18 : f32 to vector<8x1xf32>
    %46 = arith.divf %44, %45 : vector<8x1xf32>
    %47 = vector.broadcast %46 : vector<8x1xf32> to vector<8x32xf32>
    %48 = arith.subf %40, %47 : vector<8x32xf32>
    %49 = arith.mulf %48, %48 : vector<8x32xf32>
    %cst_19 = arith.constant dense<0.000000e+00> : vector<8xf32>
    %50 = vector.multi_reduction <add>, %49, %cst_19 [1] : vector<8x32xf32> to vector<8xf32>
    %51 = vector.shape_cast %50 : vector<8xf32> to vector<8x1xf32>
    %cst_20 = arith.constant 3.200000e+01 : f32
    %52 = vector.broadcast %cst_20 : f32 to vector<8x1xf32>
    %53 = arith.divf %51, %52 : vector<8x1xf32>
    %54 = vector.broadcast %46 : vector<8x1xf32> to vector<8x32xf32>
    %55 = arith.subf %40, %54 : vector<8x32xf32>
    %cst_21 = arith.constant 9.99999974E-6 : f32
    %56 = vector.broadcast %cst_21 : f32 to vector<8x1xf32>
    %57 = arith.addf %53, %56 : vector<8x1xf32>
    %58 = math.rsqrt %57 : vector<8x1xf32>
    %59 = vector.broadcast %58 : vector<8x1xf32> to vector<8x32xf32>
    %60 = arith.mulf %55, %59 : vector<8x32xf32>
    %61 = vector.broadcast %41 : vector<1x32xf32> to vector<8x32xf32>
    %62 = arith.mulf %60, %61 : vector<8x32xf32>
    %63 = vector.broadcast %42 : vector<1x32xf32> to vector<8x32xf32>
    %64 = arith.addf %62, %63 : vector<8x32xf32>
    %c0_22 = arith.constant 0 : index
    %c0_23 = arith.constant 0 : index
    %65 = vector.load %arg3[%c0_22, %c0_23] : memref<144x2048xbf16, #tpu.memory_space<vmem>>, vector<32x2048xbf16>
    %c32 = arith.constant 32 : index
    %c0_24 = arith.constant 0 : index
    %66 = vector.load %arg3[%c32, %c0_24] : memref<144x2048xbf16, #tpu.memory_space<vmem>>, vector<32x2048xbf16>
    %c128 = arith.constant 128 : index
    %c0_25 = arith.constant 0 : index
    %67 = vector.load %arg3[%c128, %c0_25] : memref<144x2048xbf16, #tpu.memory_space<vmem>>, vector<1x2048xbf16>
    %68 = arith.extf %67 : vector<1x2048xbf16> to vector<1x2048xf32>
    %69 = arith.truncf %64 : vector<8x32xf32> to vector<8x32xbf16>
    %cst_26 = arith.constant dense<0.000000e+00> : vector<8x2048xf32>
    %70 = tpu.matmul %69, %65, %cst_26 {dimension_numbers = #tpu.dot_dimension_numbers<[1], [0], [0], [1], [0, 0, 1, 1], [], []>} : vector<8x32xbf16>, vector<32x2048xbf16>, vector<8x2048xf32> -> vector<8x2048xf32>
    %71 = vector.broadcast %68 : vector<1x2048xf32> to vector<8x2048xf32>
    %72 = arith.addf %70, %71 : vector<8x2048xf32>
    %cst_27 = arith.constant 0.000000e+00 : f32
    %73 = vector.broadcast %cst_27 : f32 to vector<8x2048xf32>
    %74 = arith.maximumf %72, %73 : vector<8x2048xf32>
    %75 = arith.truncf %74 : vector<8x2048xf32> to vector<8x2048xbf16>
    %cst_28 = arith.constant dense<0.000000e+00> : vector<8x32xf32>
    %76 = tpu.matmul %75, %66, %cst_28 {dimension_numbers = #tpu.dot_dimension_numbers<[1], [1], [0], [0], [0, 0, 1, 0], [], []>} : vector<8x2048xbf16>, vector<32x2048xbf16>, vector<8x32xf32> -> vector<8x32xf32>
    %c4 = arith.constant 4 : index
    %c0_29 = arith.constant 0 : index
    %77 = vector.load %arg4[%c4, %c0_29] : memref<344x128xf32, #tpu.memory_space<vmem>>, vector<1x32xf32>
    %78 = vector.broadcast %77 : vector<1x32xf32> to vector<8x32xf32>
    %79 = arith.addf %76, %78 : vector<8x32xf32>
    %80 = arith.addf %64, %79 : vector<8x32xf32>
    %c7 = arith.constant 7 : index
    %c0_30 = arith.constant 0 : index
    %81 = vector.load %arg4[%c7, %c0_30] : memref<344x128xf32, #tpu.memory_space<vmem>>, vector<1x32xf32>
    %c8 = arith.constant 8 : index
    %c0_31 = arith.constant 0 : index
    %82 = vector.load %arg4[%c8, %c0_31] : memref<344x128xf32, #tpu.memory_space<vmem>>, vector<1x32xf32>
    %cst_32 = arith.constant dense<0.000000e+00> : vector<8xf32>
    %83 = vector.multi_reduction <add>, %80, %cst_32 [1] : vector<8x32xf32> to vector<8xf32>
    %84 = vector.shape_cast %83 : vector<8xf32> to vector<8x1xf32>
    %cst_33 = arith.constant 3.200000e+01 : f32
    %85 = vector.broadcast %cst_33 : f32 to vector<8x1xf32>
    %86 = arith.divf %84, %85 : vector<8x1xf32>
    %87 = vector.broadcast %86 : vector<8x1xf32> to vector<8x32xf32>
    %88 = arith.subf %80, %87 : vector<8x32xf32>
    %89 = arith.mulf %88, %88 : vector<8x32xf32>
    %cst_34 = arith.constant dense<0.000000e+00> : vector<8xf32>
    %90 = vector.multi_reduction <add>, %89, %cst_34 [1] : vector<8x32xf32> to vector<8xf32>
    %91 = vector.shape_cast %90 : vector<8xf32> to vector<8x1xf32>
    %cst_35 = arith.constant 3.200000e+01 : f32
    %92 = vector.broadcast %cst_35 : f32 to vector<8x1xf32>
    %93 = arith.divf %91, %92 : vector<8x1xf32>
    %94 = vector.broadcast %86 : vector<8x1xf32> to vector<8x32xf32>
    %95 = arith.subf %80, %94 : vector<8x32xf32>
    %cst_36 = arith.constant 9.99999974E-6 : f32
    %96 = vector.broadcast %cst_36 : f32 to vector<8x1xf32>
    %97 = arith.addf %93, %96 : vector<8x1xf32>
    %98 = math.rsqrt %97 : vector<8x1xf32>
    %99 = vector.broadcast %98 : vector<8x1xf32> to vector<8x32xf32>
    %100 = arith.mulf %95, %99 : vector<8x32xf32>
    %101 = vector.broadcast %81 : vector<1x32xf32> to vector<8x32xf32>
    %102 = arith.mulf %100, %101 : vector<8x32xf32>
    %103 = vector.broadcast %82 : vector<1x32xf32> to vector<8x32xf32>
    %104 = arith.addf %102, %103 : vector<8x32xf32>
    %c32_37 = arith.constant 32 : index
    %c0_38 = arith.constant 0 : index
    %105 = vector.load %arg2[%c32_37, %c0_38] : memref<64x512xbf16, #tpu.memory_space<vmem>>, vector<32x384xbf16>
    %c32_39 = arith.constant 32 : index
    %c384_40 = arith.constant 384 : index
    %106 = vector.load %arg2[%c32_39, %c384_40] : memref<64x512xbf16, #tpu.memory_space<vmem>>, vector<32x128xbf16>
    %107 = arith.truncf %104 : vector<8x32xf32> to vector<8x32xbf16>
    %cst_41 = arith.constant dense<0.000000e+00> : vector<8x384xf32>
    %108 = tpu.matmul %107, %105, %cst_41 {dimension_numbers = #tpu.dot_dimension_numbers<[1], [0], [0], [1], [0, 0, 1, 1], [], []>} : vector<8x32xbf16>, vector<32x384xbf16>, vector<8x384xf32> -> vector<8x384xf32>
    %109 = vector.extract_strided_slice %108 {offsets = [0, 0], sizes = [8, 128], strides = [1, 1]} : vector<8x384xf32> to vector<8x128xf32>
    %c9 = arith.constant 9 : index
    %c0_42 = arith.constant 0 : index
    %110 = vector.load %arg4[%c9, %c0_42] : memref<344x128xf32, #tpu.memory_space<vmem>>, vector<1x128xf32>
    %111 = vector.broadcast %110 : vector<1x128xf32> to vector<8x128xf32>
    %112 = arith.addf %109, %111 : vector<8x128xf32>
    %113 = arith.truncf %112 : vector<8x128xf32> to vector<8x128xbf16>
    %114 = vector.extract_strided_slice %108 {offsets = [0, 128], sizes = [8, 128], strides = [1, 1]} : vector<8x384xf32> to vector<8x128xf32>
    %c10 = arith.constant 10 : index
    %c0_43 = arith.constant 0 : index
    %115 = vector.load %arg4[%c10, %c0_43] : memref<344x128xf32, #tpu.memory_space<vmem>>, vector<1x128xf32>
    %116 = vector.broadcast %115 : vector<1x128xf32> to vector<8x128xf32>
    %117 = arith.addf %114, %116 : vector<8x128xf32>
    %118 = arith.truncf %117 : vector<8x128xf32> to vector<8x128xbf16>
    %119 = vector.extract_strided_slice %108 {offsets = [0, 256], sizes = [8, 128], strides = [1, 1]} : vector<8x384xf32> to vector<8x128xf32>
    %c11 = arith.constant 11 : index
    %c0_44 = arith.constant 0 : index
    %120 = vector.load %arg4[%c11, %c0_44] : memref<344x128xf32, #tpu.memory_space<vmem>>, vector<1x128xf32>
    %121 = vector.broadcast %120 : vector<1x128xf32> to vector<8x128xf32>
    %122 = arith.addf %119, %121 : vector<8x128xf32>
    %123 = arith.truncf %122 : vector<8x128xf32> to vector<8x128xbf16>
    %cst_45 = arith.constant dense<0.000000e+00> : vector<8x8xf32>
    %124 = tpu.matmul %113, %118, %cst_45 {dimension_numbers = #tpu.dot_dimension_numbers<[1], [1], [0], [0], [0, 0, 1, 0], [], []>} : vector<8x128xbf16>, vector<8x128xbf16>, vector<8x8xf32> -> vector<8x8xf32>
    %cst_46 = arith.constant 0.176776692 : f32
    %125 = vector.broadcast %cst_46 : f32 to vector<8x8xf32>
    %126 = arith.mulf %124, %125 : vector<8x8xf32>
    %cst_47 = arith.constant dense<0xFF800000> : vector<8xf32>
    %127 = vector.multi_reduction <maximumf>, %126, %cst_47 [1] : vector<8x8xf32> to vector<8xf32>
    %128 = vector.shape_cast %127 : vector<8xf32> to vector<8x1xf32>
    %129 = vector.broadcast %128 : vector<8x1xf32> to vector<8x8xf32>
    %130 = arith.subf %126, %129 : vector<8x8xf32>
    %131 = math.exp %130 : vector<8x8xf32>
    %cst_48 = arith.constant dense<0.000000e+00> : vector<8xf32>
    %132 = vector.multi_reduction <add>, %131, %cst_48 [1] : vector<8x8xf32> to vector<8xf32>
    %133 = vector.shape_cast %132 : vector<8xf32> to vector<8x1xf32>
    %134 = tpu.reciprocal %133 {approx = true} : vector<8x1xf32> -> vector<8x1xf32>
    %135 = vector.broadcast %134 : vector<8x1xf32> to vector<8x8xf32>
    %136 = arith.mulf %131, %135 : vector<8x8xf32>
    %137 = arith.truncf %136 : vector<8x8xf32> to vector<8x8xbf16>
    %cst_49 = arith.constant dense<0.000000e+00> : vector<8x128xf32>
    %138 = tpu.matmul %137, %123, %cst_49 {dimension_numbers = #tpu.dot_dimension_numbers<[1], [0], [0], [1], [0, 0, 1, 1], [], []>} : vector<8x8xbf16>, vector<8x128xbf16>, vector<8x128xf32> -> vector<8x128xf32>
    %139 = arith.truncf %138 : vector<8x128xf32> to vector<8x128xbf16>
    %cst_50 = arith.constant dense<0.000000e+00> : vector<8x32xf32>
    %140 = tpu.matmul %139, %106, %cst_50 {dimension_numbers = #tpu.dot_dimension_numbers<[1], [1], [0], [0], [0, 0, 1, 0], [], []>} : vector<8x128xbf16>, vector<32x128xbf16>, vector<8x32xf32> -> vector<8x32xf32>
    %c12 = arith.constant 12 : index
    %c0_51 = arith.constant 0 : index
    %141 = vector.load %arg4[%c12, %c0_51] : memref<344x128xf32, #tpu.memory_space<vmem>>, vector<1x32xf32>
    %142 = vector.broadcast %141 : vector<1x32xf32> to vector<8x32xf32>
    %143 = arith.addf %140, %142 : vector<8x32xf32>
    %144 = arith.addf %104, %143 : vector<8x32xf32>
    %c14 = arith.constant 14 : index
    %c0_52 = arith.constant 0 : index
    %145 = vector.load %arg4[%c14, %c0_52] : memref<344x128xf32, #tpu.memory_space<vmem>>, vector<1x32xf32>
    %c15 = arith.constant 15 : index
    %c0_53 = arith.constant 0 : index
    %146 = vector.load %arg4[%c15, %c0_53] : memref<344x128xf32, #tpu.memory_space<vmem>>, vector<1x32xf32>
    %cst_54 = arith.constant dense<0.000000e+00> : vector<8xf32>
    %147 = vector.multi_reduction <add>, %144, %cst_54 [1] : vector<8x32xf32> to vector<8xf32>
    %148 = vector.shape_cast %147 : vector<8xf32> to vector<8x1xf32>
    %cst_55 = arith.constant 3.200000e+01 : f32
    %149 = vector.broadcast %cst_55 : f32 to vector<8x1xf32>
    %150 = arith.divf %148, %149 : vector<8x1xf32>
    %151 = vector.broadcast %150 : vector<8x1xf32> to vector<8x32xf32>
    %152 = arith.subf %144, %151 : vector<8x32xf32>
    %153 = arith.mulf %152, %152 : vector<8x32xf32>
    %cst_56 = arith.constant dense<0.000000e+00> : vector<8xf32>
    %154 = vector.multi_reduction <add>, %153, %cst_56 [1] : vector<8x32xf32> to vector<8xf32>
    %155 = vector.shape_cast %154 : vector<8xf32> to vector<8x1xf32>
    %cst_57 = arith.constant 3.200000e+01 : f32
    %156 = vector.broadcast %cst_57 : f32 to vector<8x1xf32>
    %157 = arith.divf %155, %156 : vector<8x1xf32>
    %158 = vector.broadcast %150 : vector<8x1xf32> to vector<8x32xf32>
    %159 = arith.subf %144, %158 : vector<8x32xf32>
    %cst_58 = arith.constant 9.99999974E-6 : f32
    %160 = vector.broadcast %cst_58 : f32 to vector<8x1xf32>
    %161 = arith.addf %157, %160 : vector<8x1xf32>
    %162 = math.rsqrt %161 : vector<8x1xf32>
    %163 = vector.broadcast %162 : vector<8x1xf32> to vector<8x32xf32>
    %164 = arith.mulf %159, %163 : vector<8x32xf32>
    %165 = vector.broadcast %145 : vector<1x32xf32> to vector<8x32xf32>
    %166 = arith.mulf %164, %165 : vector<8x32xf32>
    %167 = vector.broadcast %146 : vector<1x32xf32> to vector<8x32xf32>
    %168 = arith.addf %166, %167 : vector<8x32xf32>
    %c64 = arith.constant 64 : index
    %c0_59 = arith.constant 0 : index
    %169 = vector.load %arg3[%c64, %c0_59] : memref<144x2048xbf16, #tpu.memory_space<vmem>>, vector<32x2048xbf16>
    %c96 = arith.constant 96 : index
    %c0_60 = arith.constant 0 : index
    %170 = vector.load %arg3[%c96, %c0_60] : memref<144x2048xbf16, #tpu.memory_space<vmem>>, vector<32x2048xbf16>
    %c129 = arith.constant 129 : index
    %c0_61 = arith.constant 0 : index
    %171 = vector.load %arg3[%c129, %c0_61] : memref<144x2048xbf16, #tpu.memory_space<vmem>>, vector<1x2048xbf16>
    %172 = arith.extf %171 : vector<1x2048xbf16> to vector<1x2048xf32>
    %173 = arith.truncf %168 : vector<8x32xf32> to vector<8x32xbf16>
    %cst_62 = arith.constant dense<0.000000e+00> : vector<8x2048xf32>
    %174 = tpu.matmul %173, %169, %cst_62 {dimension_numbers = #tpu.dot_dimension_numbers<[1], [0], [0], [1], [0, 0, 1, 1], [], []>} : vector<8x32xbf16>, vector<32x2048xbf16>, vector<8x2048xf32> -> vector<8x2048xf32>
    %175 = vector.broadcast %172 : vector<1x2048xf32> to vector<8x2048xf32>
    %176 = arith.addf %174, %175 : vector<8x2048xf32>
    %cst_63 = arith.constant 0.000000e+00 : f32
    %177 = vector.broadcast %cst_63 : f32 to vector<8x2048xf32>
    %178 = arith.maximumf %176, %177 : vector<8x2048xf32>
    %179 = arith.truncf %178 : vector<8x2048xf32> to vector<8x2048xbf16>
    %cst_64 = arith.constant dense<0.000000e+00> : vector<8x32xf32>
    %180 = tpu.matmul %179, %170, %cst_64 {dimension_numbers = #tpu.dot_dimension_numbers<[1], [1], [0], [0], [0, 0, 1, 0], [], []>} : vector<8x2048xbf16>, vector<32x2048xbf16>, vector<8x32xf32> -> vector<8x32xf32>
    %c13 = arith.constant 13 : index
    %c0_65 = arith.constant 0 : index
    %181 = vector.load %arg4[%c13, %c0_65] : memref<344x128xf32, #tpu.memory_space<vmem>>, vector<1x32xf32>
    %182 = vector.broadcast %181 : vector<1x32xf32> to vector<8x32xf32>
    %183 = arith.addf %180, %182 : vector<8x32xf32>
    %184 = arith.addf %168, %183 : vector<8x32xf32>
    %c16 = arith.constant 16 : index
    %c0_66 = arith.constant 0 : index
    %185 = vector.load %arg4[%c16, %c0_66] : memref<344x128xf32, #tpu.memory_space<vmem>>, vector<1x32xf32>
    %c17 = arith.constant 17 : index
    %c0_67 = arith.constant 0 : index
    %186 = vector.load %arg4[%c17, %c0_67] : memref<344x128xf32, #tpu.memory_space<vmem>>, vector<1x32xf32>
    %cst_68 = arith.constant dense<0.000000e+00> : vector<8xf32>
    %187 = vector.multi_reduction <add>, %184, %cst_68 [1] : vector<8x32xf32> to vector<8xf32>
    %188 = vector.shape_cast %187 : vector<8xf32> to vector<8x1xf32>
    %cst_69 = arith.constant 3.200000e+01 : f32
    %189 = vector.broadcast %cst_69 : f32 to vector<8x1xf32>
    %190 = arith.divf %188, %189 : vector<8x1xf32>
    %191 = vector.broadcast %190 : vector<8x1xf32> to vector<8x32xf32>
    %192 = arith.subf %184, %191 : vector<8x32xf32>
    %193 = arith.mulf %192, %192 : vector<8x32xf32>
    %cst_70 = arith.constant dense<0.000000e+00> : vector<8xf32>
    %194 = vector.multi_reduction <add>, %193, %cst_70 [1] : vector<8x32xf32> to vector<8xf32>
    %195 = vector.shape_cast %194 : vector<8xf32> to vector<8x1xf32>
    %cst_71 = arith.constant 3.200000e+01 : f32
    %196 = vector.broadcast %cst_71 : f32 to vector<8x1xf32>
    %197 = arith.divf %195, %196 : vector<8x1xf32>
    %198 = vector.broadcast %190 : vector<8x1xf32> to vector<8x32xf32>
    %199 = arith.subf %184, %198 : vector<8x32xf32>
    %cst_72 = arith.constant 9.99999974E-6 : f32
    %200 = vector.broadcast %cst_72 : f32 to vector<8x1xf32>
    %201 = arith.addf %197, %200 : vector<8x1xf32>
    %202 = math.rsqrt %201 : vector<8x1xf32>
    %203 = vector.broadcast %202 : vector<8x1xf32> to vector<8x32xf32>
    %204 = arith.mulf %199, %203 : vector<8x32xf32>
    %205 = vector.broadcast %185 : vector<1x32xf32> to vector<8x32xf32>
    %206 = arith.mulf %204, %205 : vector<8x32xf32>
    %207 = vector.broadcast %186 : vector<1x32xf32> to vector<8x32xf32>
    %208 = arith.addf %206, %207 : vector<8x32xf32>
    %c24 = arith.constant 24 : index
    %c0_73 = arith.constant 0 : index
    %209 = vector.load %arg4[%c24, %c0_73] : memref<344x128xf32, #tpu.memory_space<vmem>>, vector<32x128xf32>
    %cst_74 = arith.constant dense<0.000000e+00> : vector<8x128xf32>
    %210 = tpu.matmul %208, %209, %cst_74 {dimension_numbers = #tpu.dot_dimension_numbers<[1], [0], [0], [1], [0, 0, 1, 1], [], []>} : vector<8x32xf32>, vector<32x128xf32>, vector<8x128xf32> -> vector<8x128xf32>
    %c18 = arith.constant 18 : index
    %c0_75 = arith.constant 0 : index
    %211 = vector.load %arg4[%c18, %c0_75] : memref<344x128xf32, #tpu.memory_space<vmem>>, vector<1x128xf32>
    %212 = vector.broadcast %211 : vector<1x128xf32> to vector<8x128xf32>
    %213 = arith.addf %210, %212 : vector<8x128xf32>
    %cst_76 = arith.constant 0.000000e+00 : f32
    %214 = vector.broadcast %cst_76 : f32 to vector<8x128xf32>
    %215 = arith.maximumf %213, %214 : vector<8x128xf32>
    %c56 = arith.constant 56 : index
    %c0_77 = arith.constant 0 : index
    %216 = vector.load %arg4[%c56, %c0_77] : memref<344x128xf32, #tpu.memory_space<vmem>>, vector<32x128xf32>
    %cst_78 = arith.constant dense<0.000000e+00> : vector<8x128xf32>
    %217 = tpu.matmul %0, %216, %cst_78 {dimension_numbers = #tpu.dot_dimension_numbers<[1], [0], [0], [1], [0, 0, 1, 1], [], []>} : vector<8x32xf32>, vector<32x128xf32>, vector<8x128xf32> -> vector<8x128xf32>
    %c19 = arith.constant 19 : index
    %c0_79 = arith.constant 0 : index
    %218 = vector.load %arg4[%c19, %c0_79] : memref<344x128xf32, #tpu.memory_space<vmem>>, vector<1x128xf32>
    %219 = vector.broadcast %218 : vector<1x128xf32> to vector<8x128xf32>
    %220 = arith.addf %217, %219 : vector<8x128xf32>
    %cst_80 = arith.constant 0.000000e+00 : f32
    %221 = vector.broadcast %cst_80 : f32 to vector<8x128xf32>
    %222 = arith.maximumf %220, %221 : vector<8x128xf32>
    %c88 = arith.constant 88 : index
    %c0_81 = arith.constant 0 : index
    %223 = vector.load %arg4[%c88, %c0_81] : memref<344x128xf32, #tpu.memory_space<vmem>>, vector<128x128xf32>
    %cst_82 = arith.constant dense<0.000000e+00> : vector<8x128xf32>
    %224 = tpu.matmul %222, %223, %cst_82 {dimension_numbers = #tpu.dot_dimension_numbers<[1], [0], [0], [1], [0, 0, 1, 1], [], []>} : vector<8x128xf32>, vector<128x128xf32>, vector<8x128xf32> -> vector<8x128xf32>
    %c20 = arith.constant 20 : index
    %c0_83 = arith.constant 0 : index
    %225 = vector.load %arg4[%c20, %c0_83] : memref<344x128xf32, #tpu.memory_space<vmem>>, vector<1x128xf32>
    %226 = vector.broadcast %225 : vector<1x128xf32> to vector<8x128xf32>
    %227 = arith.addf %224, %226 : vector<8x128xf32>
    %cst_84 = arith.constant 0.000000e+00 : f32
    %228 = vector.broadcast %cst_84 : f32 to vector<8x128xf32>
    %229 = arith.maximumf %227, %228 : vector<8x128xf32>
    %c216 = arith.constant 216 : index
    %c0_85 = arith.constant 0 : index
    %230 = vector.load %arg4[%c216, %c0_85] : memref<344x128xf32, #tpu.memory_space<vmem>>, vector<128x128xf32>
    %cst_86 = arith.constant dense<0.000000e+00> : vector<8x128xf32>
    %231 = tpu.matmul %229, %230, %cst_86 {dimension_numbers = #tpu.dot_dimension_numbers<[1], [0], [0], [1], [0, 0, 1, 1], [], []>} : vector<8x128xf32>, vector<128x128xf32>, vector<8x128xf32> -> vector<8x128xf32>
    %c21 = arith.constant 21 : index
    %c0_87 = arith.constant 0 : index
    %232 = vector.load %arg4[%c21, %c0_87] : memref<344x128xf32, #tpu.memory_space<vmem>>, vector<1x128xf32>
    %233 = vector.broadcast %232 : vector<1x128xf32> to vector<8x128xf32>
    %234 = arith.addf %231, %233 : vector<8x128xf32>
    %cst_88 = arith.constant 0.000000e+00 : f32
    %235 = vector.broadcast %cst_88 : f32 to vector<8x128xf32>
    %236 = arith.maximumf %234, %235 : vector<8x128xf32>
    %c22 = arith.constant 22 : index
    %c0_89 = arith.constant 0 : index
    %237 = vector.load %arg4[%c22, %c0_89] : memref<344x128xf32, #tpu.memory_space<vmem>>, vector<1x128xf32>
    %238 = vector.broadcast %237 : vector<1x128xf32> to vector<8x128xf32>
    %239 = arith.mulf %215, %238 : vector<8x128xf32>
    %cst_90 = arith.constant dense<0.000000e+00> : vector<8xf32>
    %240 = vector.multi_reduction <add>, %239, %cst_90 [1] : vector<8x128xf32> to vector<8xf32>
    %241 = vector.shape_cast %240 : vector<8xf32> to vector<8x1xf32>
    %242 = vector.broadcast %237 : vector<1x128xf32> to vector<8x128xf32>
    %243 = arith.mulf %236, %242 : vector<8x128xf32>
    %cst_91 = arith.constant dense<0.000000e+00> : vector<8xf32>
    %244 = vector.multi_reduction <add>, %243, %cst_91 [1] : vector<8x128xf32> to vector<8xf32>
    %245 = vector.shape_cast %244 : vector<8xf32> to vector<8x1xf32>
    %246 = arith.maximumf %241, %245 : vector<8x1xf32>
    %247 = arith.subf %241, %246 : vector<8x1xf32>
    %248 = math.exp %247 : vector<8x1xf32>
    %249 = arith.subf %245, %246 : vector<8x1xf32>
    %250 = math.exp %249 : vector<8x1xf32>
    %251 = arith.addf %248, %250 : vector<8x1xf32>
    %252 = tpu.reciprocal %251 {approx = true} : vector<8x1xf32> -> vector<8x1xf32>
    %253 = arith.mulf %248, %252 : vector<8x1xf32>
    %254 = vector.broadcast %253 : vector<8x1xf32> to vector<8x128xf32>
    %255 = arith.mulf %254, %215 : vector<8x128xf32>
    %256 = arith.mulf %250, %252 : vector<8x1xf32>
    %257 = vector.broadcast %256 : vector<8x1xf32> to vector<8x128xf32>
    %258 = arith.mulf %257, %236 : vector<8x128xf32>
    %259 = arith.addf %255, %258 : vector<8x128xf32>
    %c0_92 = arith.constant 0 : index
    %c0_93 = arith.constant 0 : index
    %260 = vector.load %arg5[%c0_92, %c0_93] : memref<8x128xf32, #tpu.memory_space<vmem>>, vector<8x128xf32>
    tpu.vector_store %arg5[%c0_92, %c0_93], %259 {strides = array<i32>} : memref<8x128xf32, #tpu.memory_space<vmem>>, vector<8x128xf32>,
    return
  }
  func.func @transform_0(%arg0: i32) -> (i32, i32) {
    %c0_i32 = arith.constant 0 : i32
    %c0_i32_0 = arith.constant 0 : i32
    %c0_i32_1 = arith.constant 0 : i32
    return %c0_i32, %c0_i32_0 : i32, i32
  }
  func.func @transform_1(%arg0: i32) -> (i32, i32) {
    %c0_i32 = arith.constant 0 : i32
    %c0_i32_0 = arith.constant 0 : i32
    %c0_i32_1 = arith.constant 0 : i32
    return %c0_i32, %c0_i32_0 : i32, i32
  }
  func.func @transform_2(%arg0: i32) -> (i32, i32) {
    %c0_i32 = arith.constant 0 : i32
    %c0_i32_0 = arith.constant 0 : i32
    %c0_i32_1 = arith.constant 0 : i32
    return %c0_i32, %c0_i32_0 : i32, i32
  }
  func.func @transform_3(%arg0: i32) -> (i32, i32) {
    %c0_i32 = arith.constant 0 : i32
    %c0_i32_0 = arith.constant 0 : i32
    %c0_i32_1 = arith.constant 0 : i32
    return %c0_i32, %c0_i32_0 : i32, i32
  }
  func.func @transform_4(%arg0: i32) -> (i32, i32) {
    %c0_i32 = arith.constant 0 : i32
    %c0_i32_0 = arith.constant 0 : i32
    %c0_i32_1 = arith.constant 0 : i32
    return %c0_i32, %c0_i32_0 : i32, i32
  }
}

</mosaic_0001>

<bundles_post_ra>
// kernel: srpnet_forward.1
= control target key start
LH: loop header
LB: loop body
LE: loop exit
PB: predicated region body
PF: predicated region fallthrough
CT: control target
= control target key end

     0   :  { %9 = vsyncpa [#allocation3], 0  ;;  %s4547_s0 = inlined_call_operand.hbm [shape: f32[8,32], index: 0, kind: input, shape index: {}]   ;;  %s4548_s1 = inlined_call_operand.hbm [shape: bf16[64,512], index: 1, kind: input, shape index: {}]   ;;  %s4549_s2 = inlined_call_operand.hbm [shape: bf16[144,2048], index: 2, kind: input, shape index: {}]   ;;  %s4550_s3 = inlined_call_operand.hbm [shape: f32[344,128], index: 3, kind: input, shape index: {}]   ;;  %s4551_s4 = inlined_call_operand.hbm [shape: f32[8,128], index: 4, kind: output, shape index: {}]  }
   0x1   :  { %10 = vsyncpa [#allocation6], 0 }
   0x2   :  { %11 = vsyncpa [#allocation9], 0 }
   0x3   :  { %12 = vsyncpa [#allocation4], 0  ;;  %s4125_s15 = smov [#allocation5]   ;;  %s4007_s19 = scalar_lea.hbm %s4548_s1, 2048 }
   0x4   :  { %s28_s16 = sshll.u32 %s4125_s15, 4  ;;  %p4008_p0 = scmp.ne.s32.totalorder %s4548_s1, %s4007_s19  ;;  %s29_s16 = int_to_ptr.vmem [resolvable:$true] %s28_s16 }
   0x5   :  { %p4011_p1 = scmp.lt.u32.totalorder %s4007_s19, %s4548_s1 }
   0x7   :  { %p4013_p2 = pnand %p4011_p1, %p4008_p0 }
   0x9   :  { %4016 = shalt.err (!%p4013_p2)
}
   0xa   :  { %s4017_s24 = scalar_lea.vmem %s29_s16, 2048  ;;  %p4022_p4 = scmp.lt.s32.totalorder %s29_s16, %s29_s16 }
   0xb   :  { %p4018_p3 = scmp.ne.s32.totalorder %s29_s16, %s4017_s24  ;;  %p4023_p5 = scmp.lt.s32.totalorder %s4017_s24, %s4017_s24 }
   0xd   :  { %p4024_p6 = por %p4023_p5, %p4022_p4 }
   0xf   :  { %p4025_p7 = pnand %p4024_p6, %p4018_p3 }
  0x11   :  { %4028 = shalt.err (!%p4025_p7)
}
  0x12   :  { %s4126_s25 = smov 256   ;;  %s4127_s26 = smov 16  }
  0x13   :  { %34 = dma.hbm_to_vmem [thread:$0]  %s4548_s1, 2048, %s29_s16, [#allocation6], %s4126_s25, %s4126_s25, %s4127_s26  }
  0x14   :  { %s4128_s29 = smov [#allocation2]   ;;  %s4129_s5 = smov [#allocation7]  }
  0x15   :  { %s19_s30 = sshll.u32 %s4128_s29, 4  ;;  %s40_s6 = sshll.u32 %s4129_s5, 4  ;;  %s20_s30 = int_to_ptr.vmem [resolvable:$true] %s19_s30  ;;  %s41_s6 = int_to_ptr.vmem [resolvable:$true] %s40_s6 }
  0x16   :  { %s4029_s9 = scalar_lea.hbm %s4547_s0, 128 }
  0x17   :  { %p4030_p8 = scmp.ne.s32.totalorder %s4547_s0, %s4029_s9  ;;  %p4033_p9 = scmp.lt.u32.totalorder %s4029_s9, %s4547_s0 }
  0x19   :  { %p4035_p10 = pnand %p4033_p9, %p4030_p8 }
  0x1b   :  { %4038 = shalt.err (!%p4035_p10)
}
  0x1c   :  { %s4039_s1 = scalar_lea.vmem %s20_s30, 128  ;;  %p4044_p12 = scmp.lt.s32.totalorder %s20_s30, %s20_s30 }
  0x1d   :  { %p4040_p11 = scmp.ne.s32.totalorder %s20_s30, %s4039_s1  ;;  %p4045_p13 = scmp.lt.s32.totalorder %s4039_s1, %s4039_s1 }
  0x1f   :  { %p4046_p0 = por %p4045_p13, %p4044_p12 }
  0x21   :  { %p4047_p1 = pnand %p4046_p0, %p4040_p11 }
  0x23   :  { %4050 = shalt.err (!%p4047_p1)
}
  0x24   :  { %22 = dma.hbm_to_vmem [thread:$0]  %s4547_s0, 128, %s20_s30, [#allocation3]  }
  0x25   :  { %s4051_s18 = scalar_lea.hbm %s4549_s2, 18432 }
  0x26   :  { %p4052_p2 = scmp.ne.s32.totalorder %s4549_s2, %s4051_s18  ;;  %p4055_p3 = scmp.lt.u32.totalorder %s4051_s18, %s4549_s2 }
  0x28   :  { %p4057_p4 = pnand %p4055_p3, %p4052_p2 }
  0x2a   :  { %4060 = shalt.err (!%p4057_p4)
}
  0x2b   :  { %s4061_s23 = scalar_lea.vmem %s41_s6, 18432  ;;  %p4066_p6 = scmp.lt.s32.totalorder %s41_s6, %s41_s6 }
  0x2c   :  { %p4062_p5 = scmp.ne.s32.totalorder %s41_s6, %s4061_s23  ;;  %p4067_p7 = scmp.lt.s32.totalorder %s4061_s23, %s4061_s23 }
  0x2e   :  { %p4068_p8 = por %p4067_p7, %p4066_p6 }
  0x30   :  { %p4069_p9 = pnand %p4068_p8, %p4062_p5 }
  0x32   :  { %4072 = shalt.err (!%p4069_p9)
}
  0x33   :  { %s4130_s0 = smov 1024   ;;  %s4131_s24 = smov 64  }
  0x34   :  { %46 = dma.hbm_to_vmem [thread:$0]  %s4549_s2, 18432, %s41_s6, [#allocation6], %s4130_s0, %s4130_s0, %s4131_s24  }
  0x35   :  { %s4132_s27 = smov [#allocation8]   ;;  %s4073_s5 = scalar_lea.hbm %s4550_s3, 5504 }
  0x36   :  { %s52_s28 = sshll.u32 %s4132_s27, 4  ;;  %p4074_p10 = scmp.ne.s32.totalorder %s4550_s3, %s4073_s5  ;;  %s53_s28 = int_to_ptr.vmem [resolvable:$true] %s52_s28 }
  0x37   :  { %p4077_p11 = scmp.lt.u32.totalorder %s4073_s5, %s4550_s3 }
  0x39   :  { %p4079_p12 = pnand %p4077_p11, %p4074_p10 }
  0x3b   :  { %4082 = shalt.err (!%p4079_p12)
}
  0x3c   :  { %s4083_s11 = scalar_lea.vmem %s53_s28, 5504  ;;  %p4088_p0 = scmp.lt.s32.totalorder %s53_s28, %s53_s28 }
  0x3d   :  { %p4084_p13 = scmp.ne.s32.totalorder %s53_s28, %s4083_s11  ;;  %p4089_p1 = scmp.lt.s32.totalorder %s4083_s11, %s4083_s11 }
  0x3f   :  { %p4090_p2 = por %p4089_p1, %p4088_p0 }
  0x41   :  { %p4091_p3 = pnand %p4090_p2, %p4084_p13 }
  0x43   :  { %4094 = shalt.err (!%p4091_p3)
}
  0x44   :  { %s4133_s2 = smov 128   ;;  %s4134_s6 = smov 8  }
  0x45   :  { %58 = dma.hbm_to_vmem [thread:$0]  %s4550_s3, 5504, %s53_s28, [#allocation9], %s4133_s2, %s4133_s2, %s4134_s6  }
  0x46   :  { %4117 = dma.done.wait [#allocation3], 128  }
  0x47   :  { %4118 = vsyncadd [#allocation3], 4294967168 }
  0x48   :  { %4119 = dma.done.wait [#allocation6], 20480  }
  0x49   :  { %4120 = vsyncadd [#allocation6], 4294946816 }
  0x4a   :  { %4121 = dma.done.wait [#allocation9], 5504  }
  0x4b   :  { %4122 = vsyncadd [#allocation9], 4294961792  ;;  %v4135_v0 = vmov 0   ;;  %v3964_v1 = vld [vmem:[#allocation5 + $0x4] ss:$16 sps:$4 sm:$0xff]   ;;  %v4214_v5 = vld [vmem:[#allocation2] sm:$0xff] }
  0x4c   :  { %154 = vmatprep.mubr.bf16.mxu0 %v4135_v0  ;;  %v3966_v2 = vld [vmem:[#allocation5] ss:$16 sps:$4 sm:$0xff]   ;;  %122 = vmatprep.subr.bf16.mxu0 %v3964_v1  ;;  %v3967_v3 = vld [vmem:[#allocation5 + $0x24] ss:$16 sps:$4 sm:$0xff]   ;;  %v85_v6 = vpack.c.bf16 %v4214_v5, %v4214_v5  ;;  %vm118_vm0 = vcmask 261120   ;;  %v4136_v7 = vmov 0.0  }
  0x4d   :  { %v3969_v4 = vld [vmem:[#allocation5 + $0x20] ss:$16 sps:$4 sm:$0xff]   ;;  %123 = vmatpush1.bf16.msra.mxu0 %v3966_v2  ;;  %3741 = vmatprep.subr.bf16.mxu1 %v4136_v7  ;;  %vm4137_vm1 = vmmov 0   ;;  %v3970_v18 = vld [vmem:[#allocation5 + $0x8] ss:$16 sps:$4 sm:$0xff]   ;;  %vm265_vm2 = vcmask 64512  }
  0x4e   :  { %124 = vmatprep.subr.bf16.mxu0 %v3967_v3  ;;  %3745 = vmatprep.mubr.msk.bf16.mxu1 %vm4137_vm1, %v4136_v7  ;;  %v3495_v8 = vld [vmem:[#allocation8 + $0x1] ss:$0 sm:$0xff]  ;;  %v3494_v14 = vld [vmem:[#allocation8] ss:$0 sm:$0xff]  ;;  %v3971_v19 = vld [vmem:[#allocation5 + $0x28] ss:$16 sps:$4 sm:$0xff]  }
  0x4f   :  { %3742 = vmatpush3.bf16.msra.mxu1 %v3970_v18  ;;  %v3496_v26 = vld [vmem:[#allocation8 + $0x2] ss:$0 sm:$0xff]  ;;  %vm281_vm3 = vcmask 1043456   ;;  %v3972_v39 = vld [vmem:[#allocation5 + $0xc] ss:$16 sps:$4 sm:$0xff]   ;;  %v412_v2 = vld [vmem:[#allocation7 + $0x10] sm:$0xff] }
  0x50   :  { %3743 = vmatprep.subr.bf16.mxu1 %v4136_v7  ;;  %v3973_v40 = vld [vmem:[#allocation5 + $0x2c] ss:$16 sps:$4 sm:$0xff]   ;;  %v3498_v50 = vld [vmem:[#allocation8 + $0x3] ss:$0 sm:$0xff]  ;;  %s4139_s3 = smov [#allocation10]  }
  0x51   :  { %125 = vmatpush1.bf16.msra.mxu0 %v3969_v4  ;;  %v410_v63 = vld [vmem:[#allocation7] sm:$0xff]  ;;  %v420_v4 = vld [vmem:[#allocation7 + $0x50] sm:$0xff]  ;;  %v419_v18 = vld [vmem:[#allocation7 + $0x48] sm:$0xff]  ;;  %s3475_s1 = sshll.u32 %s4139_s3, 4  ;;  %s3476_s1 = int_to_ptr.vmem [resolvable:$true] %s3475_s1 }
  0x52   :  { %3749 = vmatprep.subr.bf16.mxu0 %v4136_v7  ;;  %v418_v1 = vld [vmem:[#allocation7 + $0x40] sm:$0xff]  ;;  %s4095_s14 = scalar_lea.vmem %s3476_s1, 128  ;;  %p4100_p5 = scmp.lt.s32.totalorder %s3476_s1, %s3476_s1 }
  0x53   :  { %3744 = vmatpush3.bf16.msra.mxu1 %v3971_v19  ;;  %v3504_v3 = vcombine.high %v410_v63, %v418_v1  ;;  %v414_v19 = vld [vmem:[#allocation7 + $0x20] sm:$0xff]  ;;  %p4096_p4 = scmp.ne.s32.totalorder %s3476_s1, %s4095_s14  ;;  %p4101_p6 = scmp.lt.s32.totalorder %s4095_s14, %s4095_s14 }
  0x54   :  { %3492 = vmatmul.mubr.msk.bf16.vlgmr.msra.gmra.mrb[0].mxu0 %vm118_vm0, %v85_v6  ;;  %3755 = vmatprep.subr.bf16.mxu1 %v4136_v7 }
  0x55   :  { %3751 = vmatprep.mubr.msk.bf16.mxu0 %vm4137_vm1, %v4136_v7  ;;  %p4102_p7 = por %p4101_p6, %p4100_p5 }
  0x56   :  { %3746 = vmatmul.mubr.msk.bf16.vlgmr.msra.gmra.mrb[0].mxu1 %vm118_vm0, %v85_v6  ;;  %v3503_v6 = vcombine.low %v410_v63, %v418_v1 }
  0x57   :  { %3757 = vmatprep.mubr.msk.bf16.mxu1 %vm4137_vm1, %v4136_v7  ;;  %p4103_p8 = pnand %p4102_p7, %p4096_p4 }
 0x127   :  { %v156_v9 = vpop.f32.mrb[0].mxu0 }
 0x128   :  { %v158_v10 = vpop.f32.mrb[1].mxu0  ;;  %v208_v16 = vadd.f32 %v3494_v14, %v156_v9  ;;  %v3508_v9 = vcombine.high %v412_v2, %v420_v4 }
 0x129   :  { %v215_v11 = vadd.f32 %v3495_v8, %v158_v10  ;;  %v160_v12 = vpop.f32.mrb[2].mxu0  ;;  %v197_v27 = vpop.f32.mrb[0].mxu1  ;;  %v3507_v8 = vcombine.low %v412_v2, %v420_v4  ;;  %v434_v10 = vld [vmem:[#allocation7 + $0xc0] sm:$0xff]  ;;  %v431_v2 = vld [vmem:[#allocation7 + $0xa8] sm:$0xff] }
 0x12a   :  { %v161_v13 = vpop.f32.mrb[3].mxu0  ;;  %v209_v17 = vpack.c.bf16 %v208_v16, %v208_v16  ;;  %v222_v28 = vadd.f32 %v3496_v26, %v197_v27  ;;  %v3747_v29 = vpop.f32.mrb[1].mxu1 }
 0x12b   :  { %v216_v15 = vpack.c.bf16 %v215_v11, %v215_v11  ;;  %v200_v30 = vpop.f32.mrb[2].mxu1  ;;  %v428_v11 = vld [vmem:[#allocation7 + $0x90] sm:$0xff]  ;;  %v3501_v29 = vld [vmem:[#allocation8 + $0x5] ss:$0 sm:$0xff] }
 0x12c   :  { %v223_v31 = vpack.c.bf16 %v222_v28, %v222_v28  ;;  %v3748_v32 = vpop.f32.mrb[3].mxu1  ;;  %v436_v13 = vld [vmem:[#allocation7 + $0xd0] sm:$0xff] }
 0x12d   :  { %3750 = vmatpush3.bf16.xpose.msra.mxu0 %v216_v15  ;;  %v3523_v15 = vcombine.low %v428_v11, %v436_v13  ;;  %v3524_v16 = vcombine.high %v428_v11, %v436_v13  ;;  %v441_v13 = vld [vmem:[#allocation7 + $0xf8] sm:$0xff] }
 0x12e   :  { %3761 = vmatprep.subr.bf16.mxu0 %v4136_v7  ;;  %v283_v33 = vsel %vm281_vm3, %v223_v31, 0  ;;  %v3502_v31 = vld [vmem:[#allocation8 + $0x6] ss:$0 sm:$0xff] }
 0x12f   :  { %3756 = vmatpush3.bf16.msra.mxu1 %v283_v33  ;;  %v427_v33 = vld [vmem:[#allocation7 + $0x88] sm:$0xff] }
 0x130   :  { %726 = vmatprep.subr.bf16.mxu1 %v3504_v3  ;;  %v439_v3 = vld [vmem:[#allocation7 + $0xe8] sm:$0xff] }
 0x134   :  { %3752 = vmatmul.mubr.bf16.vlgmr.msra.gmra.mrb[4].mxu0 %v209_v17  ;;  %v411_v17 = vld [vmem:[#allocation7 + $0x8] sm:$0xff] }
 0x135   :  { %3765 = vmatprep.mubr.msk.bf16.mxu0 %vm4137_vm1, %v4136_v7  ;;  %3762 = vmatpush3.bf16.xpose.msra.mxu0 %v3972_v39 }
 0x136   :  { %3763 = vmatprep.subr.bf16.mxu0 %v4136_v7 }
 0x13d   :  { %3764 = vmatpush3.bf16.xpose.msra.mxu0 %v3973_v40 }
 0x13e   :  { %808 = vmatprep.subr.bf16.mxu0 %v3508_v9  ;;  %v425_v9 = vld [vmem:[#allocation7 + $0x78] sm:$0xff] }
 0x207   :  { %v258_v20 = vpop.f32.mrb[4].mxu0 }
 0x208   :  { %v264_v21 = vmul.f32 0.17677669, %v258_v20  ;;  %v3753_v22 = vpop.f32.mrb[5].mxu0  ;;  %v3506_v20 = vcombine.high %v411_v17, %v419_v18 }
 0x209   :  { %v261_v23 = vpop.f32.mrb[6].mxu0  ;;  %v3505_v22 = vcombine.low %v411_v17, %v419_v18  ;;  %v458_v17 = vld [vmem:[#allocation7 + $0x180] sm:$0xff] }
 0x20a   :  { %v3754_v24 = vpop.f32.mrb[7].mxu0  ;;  %v266_v25 = vsel %vm265_vm2, %v264_v21, -inf  ;;  %v466_v18 = vld [vmem:[#allocation7 + $0x1c0] sm:$0xff] }
 0x20b   :  { %267 = vmax.xlane.f32.xlu0 %v266_v25 }
 0x298   :  { %v268_v34 = vpop.xlane.xlu0 %267 }
 0x299   :  { %v269_v35 = vsub.f32 %v264_v21, %v268_v34  ;;  %v422_v21 = vld [vmem:[#allocation7 + $0x60] sm:$0xff]  ;;  %v435_v34 = vld [vmem:[#allocation7 + $0xc8] sm:$0xff] }
 0x29a   :  { %v3511_v23 = vcombine.low %v414_v19, %v422_v21  ;;  %v3512_v24 = vcombine.high %v414_v19, %v422_v21  ;;  %v3522_v39 = vcombine.high %v427_v33, %v435_v34  ;;  %v443_v19 = vld [vmem:[#allocation7 + $0x108] sm:$0xff] }
 0x29b   :  { %v270_v36 = vmul.f32 1.442695, %v269_v35  ;;  %v430_v35 = vld [vmem:[#allocation7 + $0xa0] sm:$0xff]  ;;  %v451_v21 = vld [vmem:[#allocation7 + $0x148] sm:$0xff] }
 0x29d   :  { %3984 = vpow2.f32 %v270_v36  ;;  %v438_v36 = vld [vmem:[#allocation7 + $0xe0] sm:$0xff] }
 0x29e   :  { %v3528_v40 = vcombine.high %v430_v35, %v438_v36 }
 0x2a7   :  { %v3985_v37 = vpop.eup %3984 }
 0x2a8   :  { %v272_v38 = vsel %vm265_vm2, %v3985_v37, 0.0 }
 0x2a9   :  { %273 = vadd.xlane.f32.xlu0 %v272_v38 }
 0x336   :  { %v274_v41 = vpop.xlane.xlu0 %273 }
 0x337   :  { %3986 = vrcp.f32 %v274_v41  ;;  %v413_v41 = vld [vmem:[#allocation7 + $0x18] sm:$0xff] }
 0x341   :  { %v3987_v42 = vpop.eup %3986 }
 0x342   :  { %v276_v43 = vmul.f32 %v3987_v42, %v3985_v37  ;;  %v421_v42 = vld [vmem:[#allocation7 + $0x58] sm:$0xff] }
 0x344   :  { %v277_v44 = vpack.c.bf16 %v276_v43, %v276_v43  ;;  %v416_v43 = vld [vmem:[#allocation7 + $0x30] sm:$0xff] }
 0x346   :  { %3758 = vmatmul.mubr.msk.bf16.vlgmr.msra.gmra.mrb[4].mxu1 %vm265_vm2, %v277_v44  ;;  %v424_v44 = vld [vmem:[#allocation7 + $0x70] sm:$0xff] }
 0x347   :  { %758 = vmatprep.mubr.bf16.mxu1 %v4135_v0  ;;  %727 = vmatpush1.bf16.msra.mxu1 %v3503_v6  ;;  %v3530_v6 = vcombine.high %v431_v2, %v439_v3 }
 0x419   :  { %v319_v45 = vpop.f32.mrb[4].mxu1 }
 0x41a   :  { %v325_v46 = vpack.c.bf16 %v319_v45, %v319_v45  ;;  %v3759_v47 = vpop.f32.mrb[5].mxu1  ;;  %v3521_v45 = vcombine.low %v427_v33, %v435_v34  ;;  %v4271_v33 = vld [vmem:[#allocation7 + $0x118] sm:$0xff] }
 0x41b   :  { %v322_v48 = vpop.f32.mrb[6].mxu1  ;;  %v3510_v47 = vcombine.high %v413_v41, %v421_v42  ;;  %v4273_v34 = vld [vmem:[#allocation7 + $0x158] sm:$0xff] }
 0x41c   :  { %v3760_v49 = vpop.f32.mrb[7].mxu1  ;;  %3766 = vmatmul.mubr.bf16.vlgmr.msra.gmra.mrb[8].mxu0 %v325_v46  ;;  %v3527_v46 = vcombine.low %v430_v35, %v438_v36  ;;  %v3516_v48 = vcombine.high %v416_v43, %v424_v44  ;;  %v3550_v35 = vcombine.low %v4271_v33, %v4273_v34  ;;  %v3551_v36 = vcombine.high %v4271_v33, %v4273_v34  ;;  %v455_v33 = vld [vmem:[#allocation7 + $0x168] sm:$0xff]  ;;  %v4340_v34 = vld [vmem:[#allocation7 + $0x430] sm:$0x11] }
 0x41d   :  { %840 = vmatprep.mubr.bf16.mxu0 %v4135_v0  ;;  %809 = vmatpush1.bf16.msra.mxu0 %v3507_v8  ;;  %v429_v49 = vld [vmem:[#allocation7 + $0x98] sm:$0xff] }
 0x41e   :  { %810 = vmatprep.subr.bf16.mxu0 %v3524_v16  ;;  %v417_v8 = vld [vmem:[#allocation7 + $0x38] sm:$0xff] }
 0x421   :  { %811 = vmatpush1.bf16.msra.mxu0 %v3523_v15 }
 0x422   :  { %890 = vmatprep.subr.bf16.mxu0 %v3512_v24  ;;  %v3547_v24 = vcombine.high %v443_v19, %v451_v21 }
 0x4ef   :  { %v377_v51 = vpop.f32.mrb[8].mxu0 }
 0x4f0   :  { %v378_v52 = vadd.f32 %v3498_v50, %v377_v51  ;;  %v3767_v53 = vpop.f32.mrb[9].mxu0  ;;  %v437_v50 = vld [vmem:[#allocation7 + $0xd8] sm:$0xff]  ;;  %v432_v51 = vld [vmem:[#allocation7 + $0xb0] sm:$0xff] }
 0x4f1   :  { %v380_v54 = vpop.f32.mrb[10].mxu0  ;;  %v3509_v53 = vcombine.low %v413_v41, %v421_v42  ;;  %v4283_v41 = vld [vmem:[#allocation7 + $0x410] sm:$0x11] }
 0x4f2   :  { %v3768_v55 = vpop.f32.mrb[11].mxu0  ;;  %v383_v56 = vadd.f32 %v378_v52, %v4214_v5  ;;  %v426_v5 = vld [vmem:[#allocation7 + $0x80] sm:$0xff]  ;;  %v440_v52 = vld [vmem:[#allocation7 + $0xf0] sm:$0xff]  ;;  %v3515_v54 = vcombine.low %v416_v43, %v424_v44 }
 0x4f3   :  { %v3520_v12 = vcombine.high %v426_v5, %v434_v10  ;;  %v3519_v14 = vcombine.low %v426_v5, %v434_v10  ;;  %v3526_v55 = vcombine.high %v429_v49, %v437_v50  ;;  %v3529_v5 = vcombine.low %v431_v2, %v439_v3  ;;  %v460_v3 = vld [vmem:[#allocation7 + $0x190] sm:$0xff] }
 0x4f4   :  { %v386_v57 = vsel %vm118_vm0, %v383_v56, 0.0  ;;  %v3518_v10 = vcombine.high %v417_v8, %v425_v9 }
 0x4f5   :  { %387 = vadd.xlane.f32.xlu1 %v386_v57  ;;  %728 = vmatprep.subr.bf16.mxu1 %v3520_v12  ;;  %v415_v57 = vld [vmem:[#allocation7 + $0x28] sm:$0xff]  ;;  %v433_v12 = vld [vmem:[#allocation7 + $0xb8] sm:$0xff] }
 0x4f6   :  { %729 = vmatpush1.bf16.msra.mxu1 %v3519_v14  ;;  %v3517_v14 = vcombine.low %v417_v8, %v425_v9  ;;  %v3534_v15 = vcombine.high %v433_v12, %v441_v13  ;;  %v3533_v16 = vcombine.low %v433_v12, %v441_v13  ;;  %v4307_v9 = vld [vmem:[#allocation7 + $0x420] sm:$0x11]  ;;  %v4313_v12 = vld [vmem:[#allocation7 + $0x418] sm:$0x11] }
 0x4f7   :  { %767 = vmatprep.subr.bf16.mxu1 %v3506_v20  ;;  %v3561_v20 = vcombine.high %v458_v17, %v466_v18 }
 0x582   :  { %v388_v58 = vpop.xlane.xlu1 %387 }
 0x583   :  { %v390_v59 = vmul.f32 0.03125, %v388_v58  ;;  %v423_v58 = vld [vmem:[#allocation7 + $0x68] sm:$0xff] }
 0x584   :  { %v3514_v63 = vcombine.high %v415_v57, %v423_v58  ;;  %v3513_v4 = vcombine.low %v415_v57, %v423_v58 }
 0x585   :  { %v391_v60 = vsub.f32 %v383_v56, %v390_v59  ;;  %v3532_v56 = vcombine.high %v432_v51, %v440_v52  ;;  %v442_v59 = vld [vmem:[#allocation7 + $0x100] sm:$0xff] }
 0x587   :  { %v392_v61 = vmul.f32 %v391_v60, %v391_v60 }
 0x589   :  { %v393_v62 = vsel %vm118_vm0, %v392_v61, 0.0  ;;  %v3525_v61 = vcombine.low %v429_v49, %v437_v50  ;;  %v4300_v49 = vld [vmem:[#allocation7 + $0x408] sm:$0x11] }
 0x58a   :  { %394 = vadd.xlane.f32.xlu1 %v393_v62  ;;  %v3531_v62 = vcombine.low %v432_v51, %v440_v52 }
 0x617   :  { %v395_v25 = vpop.xlane.xlu1 %394 }
 0x618   :  { %v396_v26 = vmul.f32 0.03125, %v395_v25  ;;  %v459_v25 = vld [vmem:[#allocation7 + $0x188] sm:$0xff] }
 0x61a   :  { %v397_v27 = vadd.f32 1e-05, %v396_v26  ;;  %v467_v26 = vld [vmem:[#allocation7 + $0x1c8] sm:$0xff] }
 0x61c   :  { %3988 = vrsqrt.f32 %v397_v27  ;;  %v444_v27 = vld [vmem:[#allocation7 + $0x110] sm:$0xff] }
 0x626   :  { %v3989_v28 = vpop.eup %3988 }
 0x627   :  { %v399_v30 = vmul.f32 %v3989_v28, %v391_v60  ;;  %v450_v60 = vld [vmem:[#allocation7 + $0x140] sm:$0xff]  ;;  %v3563_v28 = vcombine.high %v459_v25, %v467_v26 }
 0x628   :  { %v3545_v1 = vcombine.high %v442_v59, %v450_v60  ;;  %v3544_v11 = vcombine.low %v442_v59, %v450_v60  ;;  %v485_v60 = vunpack.c.h.bf16 %v4300_v49 }
 0x629   :  { %v404_v32 = vmul.f32 %v3501_v29, %v399_v30  ;;  %v452_v29 = vld [vmem:[#allocation7 + $0x150] sm:$0xff]  ;;  %v3562_v30 = vcombine.low %v459_v25, %v467_v26 }
 0x62b   :  { %v4243_v37 = vadd.f32 %v3502_v31, %v404_v32  ;;  %v3548_v31 = vcombine.low %v444_v27, %v452_v29  ;;  %v3549_v32 = vcombine.high %v444_v27, %v452_v29  ;;  %v461_v29 = vld [vmem:[#allocation7 + $0x198] sm:$0xff] }
 0x62d   :  { %v4247_v38 = vpack.c.bf16 %v4243_v37, %v4243_v37 }
 0x62f   :  { %3535 = vmatmul.mubr.msk.bf16.vlgmr.msra.gmra.mrb[8].mxu1 %vm118_vm0, %v4247_v38  ;;  %3537 = vmatmul.mubr.msk.bf16.vlgmr.msra.gmra.mrb[12].mxu0 %vm118_vm0, %v4247_v38 }
 0x630   :  { %768 = vmatpush1.bf16.msra.mxu1 %v3505_v22  ;;  %891 = vmatpush1.bf16.msra.mxu0 %v3511_v23  ;;  %v3560_v22 = vcombine.low %v458_v17, %v466_v18  ;;  %v3546_v23 = vcombine.low %v443_v19, %v451_v21  ;;  %v491_v19 = vunpack.c.h.bf16 %v4307_v9 }
 0x631   :  { %769 = vmatprep.subr.bf16.mxu1 %v3522_v39  ;;  %892 = vmatprep.subr.bf16.mxu0 %v3528_v40  ;;  %v4281_v40 = vld [vmem:[#allocation7 + $0x400] sm:$0x11] }
 0x632   :  { %799 = vmatprep.mubr.bf16.mxu1 %v4135_v0  ;;  %922 = vmatprep.mubr.bf16.mxu0 %v4135_v0  ;;  %v482_v42 = vunpack.c.l.bf16 %v4281_v40  ;;  %v483_v44 = vunpack.c.h.bf16 %v4281_v40  ;;  %v1980_v40 = vld [vmem:[#allocation7 + $0x390] sm:$0xff] }
 0x634   :  { %770 = vmatpush1.bf16.msra.mxu1 %v3521_v45  ;;  %893 = vmatpush1.bf16.msra.mxu0 %v3527_v46  ;;  %v487_v45 = vunpack.c.h.bf16 %v4283_v41 }
 0x635   :  { %849 = vmatprep.subr.bf16.mxu1 %v3510_v47  ;;  %972 = vmatprep.subr.bf16.mxu0 %v3516_v48 }
 0x637   :  { %3536 = vmatmul.mubr.msk.bf16.vlgmr.msra.gmra.mrb[12].mxu1 %vm118_vm0, %v4247_v38  ;;  %3539 = vmatmul.mubr.msk.bf16.vlgmr.msra.gmra.mrb[16].mxu0 %vm118_vm0, %v4247_v38 }
 0x638   :  { %850 = vmatpush1.bf16.msra.mxu1 %v3509_v53  ;;  %973 = vmatpush1.bf16.msra.mxu0 %v3515_v54 }
 0x639   :  { %851 = vmatprep.subr.bf16.mxu1 %v3526_v55  ;;  %974 = vmatprep.subr.bf16.mxu0 %v3532_v56  ;;  %v484_v55 = vunpack.c.l.bf16 %v4300_v49 }
 0x63a   :  { %881 = vmatprep.mubr.bf16.mxu1 %v4135_v0  ;;  %1004 = vmatprep.mubr.bf16.mxu0 %v4135_v0 }
 0x63c   :  { %852 = vmatpush1.bf16.msra.mxu1 %v3525_v61  ;;  %975 = vmatpush1.bf16.msra.mxu0 %v3531_v62 }
 0x63d   :  { %931 = vmatprep.subr.bf16.mxu1 %v3514_v63  ;;  %1251 = vmatprep.subr.bf16.mxu0 %v3545_v1 }
 0x63f   :  { %3538 = vmatmul.mubr.msk.bf16.vlgmr.msra.gmra.mrb[16].mxu1 %vm118_vm0, %v4247_v38  ;;  %3541 = vmatmul.mubr.msk.bf16.vlgmr.msra.gmra.mrb[20].mxu0 %vm118_vm0, %v4247_v38 }
 0x640   :  { %932 = vmatpush1.bf16.msra.mxu1 %v3513_v4  ;;  %963 = vmatprep.mubr.bf16.mxu1 %v4135_v0  ;;  %v468_v4 = vld [vmem:[#allocation7 + $0x1d0] sm:$0xff] }
 0x641   :  { %933 = vmatprep.subr.bf16.mxu1 %v3530_v6  ;;  %v3565_v13 = vcombine.high %v460_v3, %v468_v4 }
 0x644   :  { %934 = vmatpush1.bf16.msra.mxu1 %v3529_v5 }
 0x645   :  { %1013 = vmatprep.subr.bf16.mxu1 %v3518_v10  ;;  %1252 = vmatpush1.bf16.xpose.msra.mxu0 %v3544_v11  ;;  %v486_v11 = vunpack.c.l.bf16 %v4283_v41 }
 0x646   :  { %1253 = vmatprep.subr.bf16.mxu0 %v3561_v20 }
 0x647   :  { %3540 = vmatmul.mubr.msk.bf16.vlgmr.msra.gmra.mrb[20].mxu1 %vm118_vm0, %v4247_v38 }
 0x648   :  { %1014 = vmatpush1.bf16.msra.mxu1 %v3517_v14  ;;  %1045 = vmatprep.mubr.bf16.mxu1 %v4135_v0 }
 0x649   :  { %1015 = vmatprep.subr.bf16.mxu1 %v3534_v15 }
 0x64c   :  { %1016 = vmatpush1.bf16.msra.mxu1 %v3533_v16 }
 0x64d   :  { %1291 = vmatprep.subr.bf16.mxu1 %v3547_v24  ;;  %1254 = vmatpush1.bf16.xpose.msra.mxu0 %v3560_v22  ;;  %v489_v24 = vunpack.c.h.bf16 %v4313_v12 }
 0x64e   :  { %1331 = vmatprep.subr.bf16.mxu0 %v3549_v32  ;;  %v469_v32 = vld [vmem:[#allocation7 + $0x1d8] sm:$0xff] }
 0x64f   :  { %3542 = vmatmul.mubr.msk.bf16.vlgmr.msra.gmra.mrb[24].mxu1 %vm118_vm0, %v4247_v38  ;;  %v499_v38 = vlaneseq }
 0x651   :  { %v4279_v39 = vshrl.u32 %v499_v38, 7  ;;  %v454_v38 = vld [vmem:[#allocation7 + $0x160] sm:$0xff] }
 0x653   :  { %v4287_v43 = vsub.s32 0, %v4279_v39 }
 0x655   :  { %1292 = vmatpush1.bf16.xpose.msra.mxu1 %v3546_v23  ;;  %v502_v46 = vrot.slane %v482_v42, %v4287_v43  ;;  %v506_v47 = vrot.slane %v483_v44, %v4287_v43  ;;  %v522_v48 = vrot.slane %v487_v45, %v4287_v43  ;;  %v510_v6 = vrot.slane %v484_v55, %v4287_v43 }
 0x656   :  { %1293 = vmatprep.subr.bf16.mxu1 %v3563_v28  ;;  %v514_v5 = vrot.slane %v485_v60, %v4287_v43  ;;  %v518_v25 = vrot.slane %v486_v11, %v4287_v43 }
 0x65d   :  { %1294 = vmatpush1.bf16.xpose.msra.mxu1 %v3562_v30 }
 0x65e   :  { %1371 = vmatprep.subr.bf16.mxu1 %v3551_v36  ;;  %v446_v36 = vld [vmem:[#allocation7 + $0x120] sm:$0xff] }
 0x702   :  { %v760_v50 = vpop.f32.mrb[8].mxu1  ;;  %v842_v51 = vpop.f32.mrb[12].mxu0 }
 0x703   :  { %v761_v52 = vadd.f32 %v760_v50, %v502_v46  ;;  %v762_v53 = vpop.f32.mrb[9].mxu1  ;;  %v844_v54 = vpop.f32.mrb[13].mxu0  ;;  %v530_v50 = vrot.slane %v489_v24, %v4287_v43 }
 0x704   :  { %v763_v56 = vadd.f32 %v762_v53, %v506_v47  ;;  %v845_v57 = vadd.f32 %v844_v54, %v522_v48  ;;  %v764_v58 = vpop.f32.mrb[10].mxu1  ;;  %v846_v59 = vpop.f32.mrb[14].mxu0  ;;  %v488_v47 = vunpack.c.l.bf16 %v4313_v12  ;;  %v3564_v48 = vcombine.low %v460_v3, %v468_v4  ;;  %v4329_v54 = vld [vmem:[#allocation7 + $0x428] sm:$0x11] }
 0x705   :  { %v1054_v61 = vmax.f32 %v761_v52, 0.0  ;;  %v765_v62 = vpop.f32.mrb[11].mxu1  ;;  %v847_v63 = vpop.f32.mrb[15].mxu0  ;;  %v843_v52 = vadd.f32 %v842_v51, %v518_v25  ;;  %v493_v3 = vunpack.c.h.bf16 %v4329_v54 }
 0x706   :  { %v1055_v1 = vmax.f32 %v763_v56, 0.0  ;;  %v1059_v2 = vmax.f32 %v845_v57, 0.0  ;;  %v3567_v56 = vcombine.high %v461_v29, %v469_v32  ;;  %v3553_v57 = vcombine.high %v446_v36, %v454_v38 }
 0x707   :  { %v1070_v10 = vpack.c.bf16 %v1054_v61, %v1054_v61  ;;  %v1058_v4 = vmax.f32 %v843_v52, 0.0  ;;  %v463_v52 = vld [vmem:[#allocation7 + $0x1a8] sm:$0xff] }
 0x708   :  { %v1071_v8 = vpack.c.bf16 %v1055_v1, %v1055_v1  ;;  %v1075_v14 = vpack.c.bf16 %v1059_v2, %v1059_v2 }
 0x70a   :  { %v801_v15 = vpop.f32.mrb[12].mxu1  ;;  %v4315_v16 = vpop.f32.mrb[16].mxu0  ;;  %1283 = vmatprep.mubr.bf16.mxu0 %v1071_v8 }
 0x70b   :  { %v802_v17 = vadd.f32 %v801_v15, %v510_v6  ;;  %v803_v18 = vpop.f32.mrb[13].mxu1  ;;  %v926_v20 = vpop.f32.mrb[17].mxu0  ;;  %1284 = vmatmul.mubr.bf16.vlgmr.msra.gmra.mrb[24].mxu0 %v1070_v10  ;;  %v526_v6 = vrot.slane %v488_v47, %v4287_v43 }
 0x70c   :  { %v804_v21 = vadd.f32 %v803_v18, %v514_v5  ;;  %1332 = vmatpush1.bf16.xpose.msra.mxu0 %v3548_v31  ;;  %v805_v22 = vpop.f32.mrb[14].mxu1  ;;  %v928_v23 = vpop.f32.mrb[18].mxu0  ;;  %1363 = vmatprep.mubr.bf16.mxu0 %v1075_v14  ;;  %v538_v31 = vrot.slane %v491_v19, %v4287_v43  ;;  %v470_v14 = vld [vmem:[#allocation7 + $0x1e0] sm:$0xff]  ;;  %v3566_v18 = vcombine.low %v461_v29, %v469_v32 }
 0x70d   :  { %v1056_v26 = vmax.f32 %v802_v17, 0.0  ;;  %v806_v27 = vpop.f32.mrb[15].mxu1  ;;  %v929_v28 = vpop.f32.mrb[19].mxu0  ;;  %1333 = vmatprep.subr.bf16.mxu0 %v3565_v13  ;;  %v462_v13 = vld [vmem:[#allocation7 + $0x1a0] sm:$0xff]  ;;  %v447_v17 = vld [vmem:[#allocation7 + $0x128] sm:$0xff]  ;;  %v1074_v22 = vpack.c.bf16 %v1058_v4, %v1058_v4  ;;  %v490_v23 = vunpack.c.l.bf16 %v4307_v9 }
 0x70e   :  { %v1057_v30 = vmax.f32 %v804_v21, 0.0  ;;  %v927_v61 = vadd.f32 %v926_v20, %v538_v31  ;;  %v3552_v20 = vcombine.low %v446_v36, %v454_v38  ;;  %v546_v21 = vrot.slane %v493_v3, %v4287_v43 }
 0x70f   :  { %v1072_v53 = vpack.c.bf16 %v1056_v26, %v1056_v26  ;;  %v3569_v26 = vcombine.high %v462_v13, %v470_v14  ;;  %v3555_v28 = vcombine.high %v447_v17, %v455_v33  ;;  %v495_v31 = vunpack.c.h.bf16 %v4340_v34 }
 0x710   :  { %v1073_v46 = vpack.c.bf16 %v1057_v30, %v1057_v30  ;;  %v1063_v15 = vmax.f32 %v927_v61, 0.0  ;;  %v534_v32 = vrot.slane %v490_v23, %v4287_v43  ;;  %v492_v61 = vunpack.c.l.bf16 %v4329_v54 }
 0x712   :  { %v883_v58 = vpop.f32.mrb[16].mxu1  ;;  %v4331_v59 = vpop.f32.mrb[20].mxu0  ;;  %1323 = vmatprep.mubr.bf16.mxu1 %v1073_v46  ;;  %v1079_v30 = vpack.c.bf16 %v1063_v15, %v1063_v15 }
 0x713   :  { %v885_v62 = vpop.f32.mrb[17].mxu1  ;;  %v1008_v63 = vpop.f32.mrb[21].mxu0  ;;  %1324 = vmatmul.mubr.bf16.vlgmr.msra.gmra.mrb[28].mxu1 %v1072_v53  ;;  %v884_v25 = vadd.f32 %v883_v58, %v526_v6  ;;  %v471_v53 = vld [vmem:[#allocation7 + $0x1e8] sm:$0xff]  ;;  %v456_v58 = vld [vmem:[#allocation7 + $0x170] sm:$0xff] }
 0x714   :  { %v886_v1 = vadd.f32 %v885_v62, %v530_v50  ;;  %1334 = vmatpush1.bf16.xpose.msra.mxu0 %v3564_v48  ;;  %1372 = vmatpush1.bf16.xpose.msra.mxu1 %v3550_v35  ;;  %v887_v51 = vpop.f32.mrb[18].mxu1  ;;  %v1010_v2 = vpop.f32.mrb[22].mxu0  ;;  %v4354_v62 = vld [vmem:[#allocation7 + $0x438] sm:$0x11] }
 0x715   :  { %v888_v8 = vpop.f32.mrb[19].mxu1  ;;  %v1011_v5 = vpop.f32.mrb[23].mxu0  ;;  %1373 = vmatprep.subr.bf16.mxu1 %v3567_v56  ;;  %1411 = vmatprep.subr.bf16.mxu0 %v3553_v57  ;;  %v1060_v36 = vmax.f32 %v884_v25, 0.0  ;;  %v554_v56 = vrot.slane %v495_v31, %v4287_v43  ;;  %v448_v57 = vld [vmem:[#allocation7 + $0x130] sm:$0xff]  ;;  %v3554_v51 = vcombine.low %v447_v17, %v455_v33  ;;  %v925_v2 = vadd.f32 %v4315_v16, %v534_v32  ;;  %v457_v25 = vld [vmem:[#allocation7 + $0x178] sm:$0xff] }
 0x716   :  { %v1061_v10 = vmax.f32 %v886_v1, 0.0  ;;  %v3568_v1 = vcombine.low %v462_v13, %v470_v14  ;;  %v3571_v8 = vcombine.high %v463_v52, %v471_v53  ;;  %v542_v13 = vrot.slane %v492_v61, %v4287_v43  ;;  %v464_v14 = vld [vmem:[#allocation7 + $0x1b0] sm:$0xff] }
 0x717   :  { %v1076_v4 = vpack.c.bf16 %v1060_v36, %v1060_v36  ;;  %v1009_v15 = vadd.f32 %v1008_v63, %v554_v56  ;;  %v472_v17 = vld [vmem:[#allocation7 + $0x1f0] sm:$0xff] }
 0x718   :  { %v1077_v35 = vpack.c.bf16 %v1061_v10, %v1061_v10  ;;  %v3557_v10 = vcombine.high %v448_v57, %v456_v58 }
 0x719   :  { %v1067_v33 = vmax.f32 %v1009_v15, 0.0 }
 0x71a   :  { %v965_v27 = vpop.f32.mrb[20].mxu1  ;;  %1403 = vmatprep.mubr.bf16.mxu1 %v1077_v35  ;;  %v497_v35 = vunpack.c.h.bf16 %v4354_v62 }
 0x71b   :  { %1364 = vmatmul.mubr.bf16.vlgmr.msra.gmra.mrb[28].mxu0 %v1074_v22  ;;  %v967_v46 = vpop.f32.mrb[21].mxu1  ;;  %v449_v22 = vld [vmem:[#allocation7 + $0x138] sm:$0xff]  ;;  %v1083_v36 = vpack.c.bf16 %v1067_v33, %v1067_v33 }
 0x71c   :  { %v968_v48 = vadd.f32 %v967_v46, %v546_v21  ;;  %1374 = vmatpush1.bf16.xpose.msra.mxu1 %v3566_v18  ;;  %1412 = vmatpush1.bf16.xpose.msra.mxu0 %v3552_v20  ;;  %v969_v29 = vpop.f32.mrb[22].mxu1  ;;  %v1062_v21 = vmax.f32 %v925_v2, 0.0  ;;  %v562_v63 = vrot.slane %v497_v35, %v4287_v43  ;;  %v494_v46 = vunpack.c.l.bf16 %v4340_v34 }
 0x71d   :  { %1443 = vmatprep.mubr.bf16.mxu0 %v1079_v30  ;;  %v970_v38 = vpop.f32.mrb[23].mxu1  ;;  %1413 = vmatprep.subr.bf16.mxu0 %v3569_v26  ;;  %v3570_v26 = vcombine.low %v463_v52, %v471_v53  ;;  %v3573_v29 = vcombine.high %v464_v14, %v472_v17  ;;  %v3559_v32 = vcombine.high %v449_v22, %v457_v25  ;;  %v465_v52 = vld [vmem:[#allocation7 + $0x1b8] sm:$0xff]  ;;  %v496_v2 = vunpack.c.l.bf16 %v4354_v62  ;;  %v3178_v62 = vld [vmem:[#allocation8 + $0x48] sm:$0xff] }
 0x71e   :  { %v1065_v50 = vmax.f32 %v968_v48, 0.0  ;;  %1451 = vmatprep.subr.bf16.mxu1 %v3555_v28  ;;  %v3556_v28 = vcombine.low %v448_v57, %v456_v58  ;;  %v1078_v30 = vpack.c.bf16 %v1062_v21, %v1062_v21  ;;  %v966_v48 = vadd.f32 %v965_v27, %v542_v13  ;;  %v473_v53 = vld [vmem:[#allocation7 + $0x1f8] sm:$0xff] }
 0x71f   :  { %v3572_v58 = vcombine.low %v464_v14, %v472_v17  ;;  %v3558_v27 = vcombine.low %v449_v22, %v457_v25  ;;  %v3574_v15 = vcombine.low %v465_v52, %v473_v53  ;;  %v3543_v17 = vld [vmem:[#allocation8 + $0x4] ss:$0 sm:$0xff] }
 0x720   :  { %v1081_v6 = vpack.c.bf16 %v1065_v50, %v1065_v50  ;;  %v550_v50 = vrot.slane %v494_v46, %v4287_v43  ;;  %v1064_v56 = vmax.f32 %v966_v48, 0.0 }
 0x722   :  { %v1047_v5 = vpop.f32.mrb[24].mxu1 }
 0x723   :  { %1404 = vmatmul.mubr.bf16.vlgmr.msra.gmra.mrb[32].mxu1 %v1076_v4  ;;  %v1049_v18 = vpop.f32.mrb[25].mxu1  ;;  %v3575_v4 = vcombine.high %v465_v52, %v473_v53 }
 0x724   :  { %1414 = vmatpush1.bf16.xpose.msra.mxu0 %v3568_v1  ;;  %1452 = vmatpush1.bf16.xpose.msra.mxu1 %v3554_v51  ;;  %v1051_v20 = vpop.f32.mrb[26].mxu1  ;;  %v1050_v38 = vadd.f32 %v1049_v18, %v562_v63  ;;  %v1007_v1 = vadd.f32 %v4331_v59, %v550_v50  ;;  %v1080_v51 = vpack.c.bf16 %v1064_v56, %v1064_v56 }
 0x725   :  { %1483 = vmatprep.mubr.bf16.mxu1 %v1081_v6  ;;  %v1052_v16 = vpop.f32.mrb[27].mxu1  ;;  %1453 = vmatprep.subr.bf16.mxu1 %v3571_v8 }
 0x726   :  { %1491 = vmatprep.subr.bf16.mxu0 %v3557_v10  ;;  %v1069_v57 = vmax.f32 %v1050_v38, 0.0  ;;  %v1066_v8 = vmax.f32 %v1007_v1, 0.0  ;;  %v558_v10 = vrot.slane %v496_v2, %v4287_v43 }
 0x728   :  { %v1085_v6 = vpack.c.bf16 %v1069_v57, %v1069_v57  ;;  %v1082_v18 = vpack.c.bf16 %v1066_v8, %v1066_v8  ;;  %v1048_v20 = vadd.f32 %v1047_v5, %v558_v10 }
 0x72a   :  { %v1068_v59 = vmax.f32 %v1048_v20, 0.0 }
 0x72b   :  { %1444 = vmatmul.mubr.bf16.vlgmr.msra.gmra.mrb[32].mxu0 %v1078_v30 }
 0x72c   :  { %1454 = vmatpush1.bf16.xpose.msra.mxu1 %v3570_v26  ;;  %1492 = vmatpush1.bf16.xpose.msra.mxu0 %v3556_v28  ;;  %v1084_v21 = vpack.c.bf16 %v1068_v59, %v1068_v59 }
 0x72d   :  { %1523 = vmatprep.mubr.bf16.mxu0 %v1083_v36  ;;  %1493 = vmatprep.subr.bf16.mxu0 %v3573_v29 }
 0x72e   :  { %1531 = vmatprep.subr.bf16.mxu1 %v3559_v32 }
 0x733   :  { %1484 = vmatmul.mubr.bf16.vlgmr.msra.gmra.mrb[36].mxu1 %v1080_v51 }
 0x734   :  { %1494 = vmatpush1.bf16.xpose.msra.mxu0 %v3572_v58  ;;  %1532 = vmatpush1.bf16.xpose.msra.mxu1 %v3558_v27 }
 0x735   :  { %1563 = vmatprep.mubr.bf16.mxu1 %v1085_v6  ;;  %1533 = vmatprep.subr.bf16.mxu1 %v3575_v4 }
 0x73b   :  { %1524 = vmatmul.mubr.bf16.vlgmr.msra.gmra.mrb[36].mxu0 %v1082_v18 }
 0x73c   :  { %1534 = vmatpush1.bf16.xpose.msra.mxu1 %v3574_v15  ;;  %1677 = vmatprep.mubr.bf16.mxu0 %v4135_v0 }
 0x73d   :  { %3769 = vmatprep.subr.bf16.mxu1 %v4136_v7 }
 0x743   :  { %1564 = vmatmul.mubr.bf16.vlgmr.msra.gmra.mrb[40].mxu1 %v1084_v21 }
 0x744   :  { %3773 = vmatprep.mubr.msk.bf16.mxu1 %vm4137_vm1, %v4136_v7 }
 0x7de   :  { %v1285_v13 = vpop.f32.mrb[24].mxu0 }
 0x7df   :  { %v1287_v16 = vpop.f32.mrb[25].mxu0  ;;  %v1286_v33 = vadd.f32 %v3543_v17, %v1285_v13 }
 0x7e0   :  { %v1288_v43 = vpop.f32.mrb[26].mxu0 }
 0x7e1   :  { %v1289_v14 = vpop.f32.mrb[27].mxu0 }
 0x7e6   :  { %v1325_v63 = vpop.f32.mrb[28].mxu1 }
 0x7e7   :  { %v1326_v5 = vadd.f32 %v1325_v63, %v1286_v33  ;;  %v1327_v22 = vpop.f32.mrb[29].mxu1 }
 0x7e8   :  { %v1328_v25 = vpop.f32.mrb[30].mxu1 }
 0x7e9   :  { %v1329_v26 = vpop.f32.mrb[31].mxu1 }
 0x7ee   :  { %v1365_v28 = vpop.f32.mrb[28].mxu0 }
 0x7ef   :  { %v1366_v30 = vadd.f32 %v1365_v28, %v1326_v5  ;;  %v1367_v48 = vpop.f32.mrb[29].mxu0 }
 0x7f0   :  { %v1368_v29 = vpop.f32.mrb[30].mxu0  ;;  %v3974_v48 = vld [vmem:[#allocation5 + $0x40] ss:$16 sps:$4 sm:$0xff]  }
 0x7f1   :  { %v1369_v32 = vpop.f32.mrb[31].mxu0  ;;  %v3977_v29 = vld [vmem:[#allocation5 + $0x48] ss:$16 sps:$4 sm:$0xff]  }
 0x7f2   :  { %3770 = vmatpush3.bf16.msra.mxu1 %v3977_v29  ;;  %v3978_v32 = vld [vmem:[#allocation5 + $0x60] ss:$16 sps:$4 sm:$0xff]  }
 0x7f3   :  { %3771 = vmatprep.subr.bf16.mxu1 %v4136_v7 }
 0x7f6   :  { %v1405_v36 = vpop.f32.mrb[32].mxu1 }
 0x7f7   :  { %v1406_v38 = vadd.f32 %v1405_v36, %v1366_v30  ;;  %v1407_v50 = vpop.f32.mrb[33].mxu1  ;;  %v3976_v30 = vld [vmem:[#allocation5 + $0x44] ss:$16 sps:$4 sm:$0xff]  }
 0x7f8   :  { %v1408_v56 = vpop.f32.mrb[34].mxu1  ;;  %1645 = vmatprep.subr.bf16.mxu0 %v3976_v30  ;;  %v3980_v36 = vld [vmem:[#allocation5 + $0x64] ss:$16 sps:$4 sm:$0xff]  }
 0x7f9   :  { %v1409_v52 = vpop.f32.mrb[35].mxu1  ;;  %1646 = vmatpush1.bf16.msra.mxu0 %v3974_v48 }
 0x7fa   :  { %1647 = vmatprep.subr.bf16.mxu0 %v3980_v36 }
 0x7fd   :  { %1648 = vmatpush1.bf16.msra.mxu0 %v3978_v32 }
 0x7fe   :  { %v1445_v53 = vpop.f32.mrb[32].mxu0  ;;  %3777 = vmatprep.subr.bf16.mxu0 %v4136_v7 }
 0x7ff   :  { %v1446_v57 = vadd.f32 %v1445_v53, %v1406_v38  ;;  %v1447_v58 = vpop.f32.mrb[33].mxu0  ;;  %v3981_v38 = vld [vmem:[#allocation5 + $0x68] ss:$16 sps:$4 sm:$0xff]   ;;  %v3576_v53 = vld [vmem:[#allocation8 + $0x7] ss:$0 sm:$0xff] }
 0x800   :  { %v1448_v27 = vpop.f32.mrb[34].mxu0  ;;  %3772 = vmatpush3.bf16.msra.mxu1 %v3981_v38  ;;  %v3577_v58 = vld [vmem:[#allocation8 + $0x8] ss:$0 sm:$0xff] }
 0x801   :  { %v1449_v1 = vpop.f32.mrb[35].mxu0  ;;  %3783 = vmatprep.subr.bf16.mxu1 %v4136_v7 }
 0x806   :  { %v1485_v51 = vpop.f32.mrb[36].mxu1 }
 0x807   :  { %v1486_v4 = vadd.f32 %v1485_v51, %v1446_v57  ;;  %v1487_v6 = vpop.f32.mrb[37].mxu1 }
 0x808   :  { %v1488_v8 = vpop.f32.mrb[38].mxu1  ;;  %v3587_v6 = vld [vmem:[#allocation8 + $0xa] ss:$0 sm:$0xff] }
 0x809   :  { %v1489_v10 = vpop.f32.mrb[39].mxu1 }
 0x80e   :  { %v1525_v15 = vpop.f32.mrb[36].mxu0 }
 0x80f   :  { %v1526_v18 = vadd.f32 %v1525_v15, %v1486_v4  ;;  %v1527_v20 = vpop.f32.mrb[37].mxu0  ;;  %v3588_v4 = vld [vmem:[#allocation8 + $0xb] ss:$0 sm:$0xff] }
 0x810   :  { %v1528_v59 = vpop.f32.mrb[38].mxu0 }
 0x811   :  { %v1529_v21 = vpop.f32.mrb[39].mxu0 }
 0x816   :  { %v1565_v13 = vpop.f32.mrb[40].mxu1 }
 0x817   :  { %v1566_v16 = vadd.f32 %v1565_v13, %v1526_v18  ;;  %v1567_v43 = vpop.f32.mrb[41].mxu1 }
 0x818   :  { %v1568_v14 = vpop.f32.mrb[42].mxu1 }
 0x819   :  { %v1569_v17 = vpop.f32.mrb[43].mxu1  ;;  %v1571_v33 = vadd.f32 %v1566_v16, %v4243_v37 }
 0x81a   :  { %v3586_v17 = vld [vmem:[#allocation8 + $0x9] ss:$0 sm:$0xff] }
 0x81b   :  { %v1574_v63 = vsel %vm118_vm0, %v1571_v33, 0.0 }
 0x81c   :  { %1575 = vadd.xlane.f32.xlu0 %v1574_v63 }
 0x8a9   :  { %v1576_v5 = vpop.xlane.xlu0 %1575 }
 0x8aa   :  { %v1577_v22 = vmul.f32 0.03125, %v1576_v5 }
 0x8ac   :  { %v1578_v25 = vsub.f32 %v1571_v33, %v1577_v22 }
 0x8ae   :  { %v1579_v26 = vmul.f32 %v1578_v25, %v1578_v25 }
 0x8b0   :  { %v1580_v28 = vsel %vm118_vm0, %v1579_v26, 0.0 }
 0x8b1   :  { %1581 = vadd.xlane.f32.xlu1 %v1580_v28 }
 0x93e   :  { %v1582_v37 = vpop.xlane.xlu1 %1581 }
 0x93f   :  { %v1583_v50 = vmul.f32 0.03125, %v1582_v37 }
 0x941   :  { %v1584_v56 = vadd.f32 1e-05, %v1583_v50 }
 0x943   :  { %3990 = vrsqrt.f32 %v1584_v56  ;;  %v3982_v56 = vld [vmem:[#allocation5 + $0x4c] ss:$16 sps:$4 sm:$0xff]  }
 0x94d   :  { %v3991_v52 = vpop.eup %3990 }
 0x94e   :  { %v1586_v57 = vmul.f32 %v3991_v52, %v1578_v25  ;;  %v3983_v52 = vld [vmem:[#allocation5 + $0x6c] ss:$16 sps:$4 sm:$0xff]  }
 0x950   :  { %v1591_v27 = vmul.f32 %v3576_v53, %v1586_v57 }
 0x952   :  { %v4383_v1 = vadd.f32 %v3577_v58, %v1591_v27 }
 0x954   :  { %v1609_v51 = vpack.c.bf16 %v4383_v1, %v4383_v1 }
 0x956   :  { %3584 = vmatmul.mubr.msk.bf16.vlgmr.msra.gmra.mrb[40].mxu0 %vm118_vm0, %v1609_v51  ;;  %3774 = vmatmul.mubr.msk.bf16.vlgmr.msra.gmra.mrb[44].mxu1 %vm118_vm0, %v1609_v51 }
 0x957   :  { %3779 = vmatprep.mubr.msk.bf16.mxu0 %vm4137_vm1, %v4136_v7  ;;  %3785 = vmatprep.mubr.msk.bf16.mxu1 %vm4137_vm1, %v4136_v7 }
 0xa29   :  { %v1679_v8 = vpop.f32.mrb[40].mxu0  ;;  %v1720_v10 = vpop.f32.mrb[44].mxu1 }
 0xa2a   :  { %v1745_v15 = vadd.f32 %v3588_v4, %v1720_v10  ;;  %v1681_v18 = vpop.f32.mrb[41].mxu0  ;;  %v3775_v20 = vpop.f32.mrb[45].mxu1  ;;  %v1731_v5 = vadd.f32 %v3586_v17, %v1679_v8 }
 0xa2b   :  { %v1738_v59 = vadd.f32 %v3587_v6, %v1681_v18  ;;  %v1683_v21 = vpop.f32.mrb[42].mxu0  ;;  %v1723_v13 = vpop.f32.mrb[46].mxu1 }
 0xa2c   :  { %v1746_v16 = vpack.c.bf16 %v1745_v15, %v1745_v15  ;;  %v1684_v43 = vpop.f32.mrb[43].mxu0  ;;  %v3776_v14 = vpop.f32.mrb[47].mxu1  ;;  %v1732_v22 = vpack.c.bf16 %v1731_v5, %v1731_v5  ;;  %v3590_v15 = vld [vmem:[#allocation8 + $0xc] ss:$0 sm:$0xff] }
 0xa2d   :  { %v1739_v33 = vpack.c.bf16 %v1738_v59, %v1738_v59 }
 0xa2e   :  { %v1804_v63 = vsel %vm281_vm3, %v1746_v16, 0 }
 0xa2f   :  { %3778 = vmatpush3.bf16.xpose.msra.mxu0 %v1739_v33  ;;  %3784 = vmatpush3.bf16.msra.mxu1 %v1804_v63 }
 0xa30   :  { %3789 = vmatprep.subr.bf16.mxu0 %v4136_v7 }
 0xa36   :  { %3780 = vmatmul.mubr.bf16.vlgmr.msra.gmra.mrb[44].mxu0 %v1732_v22  ;;  %v1930_v22 = vld [vmem:[#allocation7 + $0x200] sm:$0xff] }
 0xa37   :  { %3793 = vmatprep.mubr.msk.bf16.mxu0 %vm4137_vm1, %v4136_v7  ;;  %3790 = vmatpush3.bf16.xpose.msra.mxu0 %v3982_v56 }
 0xa38   :  { %3791 = vmatprep.subr.bf16.mxu0 %v4136_v7 }
 0xa3f   :  { %3792 = vmatpush3.bf16.xpose.msra.mxu0 %v3983_v52 }
 0xb09   :  { %v1781_v25 = vpop.f32.mrb[44].mxu0 }
 0xb0a   :  { %v1787_v26 = vmul.f32 0.17677669, %v1781_v25  ;;  %v3781_v28 = vpop.f32.mrb[45].mxu0  ;;  %v1938_v25 = vld [vmem:[#allocation7 + $0x240] sm:$0xff] }
 0xb0b   :  { %v1784_v30 = vpop.f32.mrb[46].mxu0  ;;  %v3596_v28 = vcombine.high %v1930_v22, %v1938_v25 }
 0xb0c   :  { %v3782_v48 = vpop.f32.mrb[47].mxu0  ;;  %v1788_v29 = vsel %vm265_vm2, %v1787_v26, -inf  ;;  %v1940_v30 = vld [vmem:[#allocation7 + $0x250] sm:$0xff] }
 0xb0d   :  { %1789 = vmax.xlane.f32.xlu0 %v1788_v29  ;;  %v3595_v48 = vcombine.low %v1930_v22, %v1938_v25  ;;  %2222 = vmatprep.subr.bf16.mxu1 %v3596_v28 }
 0xb9a   :  { %v1790_v32 = vpop.xlane.xlu0 %1789 }
 0xb9b   :  { %v1791_v36 = vsub.f32 %v1787_v26, %v1790_v32  ;;  %v1932_v26 = vld [vmem:[#allocation7 + $0x210] sm:$0xff] }
 0xb9c   :  { %v3599_v29 = vcombine.low %v1932_v26, %v1940_v30  ;;  %v3600_v32 = vcombine.high %v1932_v26, %v1940_v30  ;;  %v1933_v30 = vld [vmem:[#allocation7 + $0x218] sm:$0xff] }
 0xb9d   :  { %v1792_v38 = vmul.f32 1.442695, %v1791_v36  ;;  %v1954_v36 = vld [vmem:[#allocation7 + $0x2c0] sm:$0xff] }
 0xb9e   :  { %2304 = vmatprep.subr.bf16.mxu0 %v3600_v32  ;;  %v1944_v32 = vld [vmem:[#allocation7 + $0x270] sm:$0xff] }
 0xb9f   :  { %3992 = vpow2.f32 %v1792_v38  ;;  %v1948_v38 = vld [vmem:[#allocation7 + $0x290] sm:$0xff] }
 0xba9   :  { %v3993_v37 = vpop.eup %3992 }
 0xbaa   :  { %v1794_v50 = vsel %vm265_vm2, %v3993_v37, 0.0 }
 0xbab   :  { %1795 = vadd.xlane.f32.xlu1 %v1794_v50  ;;  %v1956_v50 = vld [vmem:[#allocation7 + $0x2d0] sm:$0xff] }
 0xbac   :  { %v3615_v52 = vcombine.low %v1948_v38, %v1956_v50 }
 0xc38   :  { %v1796_v53 = vpop.xlane.xlu1 %1795 }
 0xc39   :  { %3994 = vrcp.f32 %v1796_v53  ;;  %v3616_v53 = vcombine.high %v1948_v38, %v1956_v50  ;;  %v1957_v50 = vld [vmem:[#allocation7 + $0x2d8] sm:$0xff] }
 0xc43   :  { %v3995_v57 = vpop.eup %3994 }
 0xc44   :  { %v1798_v58 = vmul.f32 %v3995_v57, %v3993_v37  ;;  %v1931_v57 = vld [vmem:[#allocation7 + $0x208] sm:$0xff] }
 0xc46   :  { %v1799_v27 = vpack.c.bf16 %v1798_v58, %v1798_v58  ;;  %v1939_v58 = vld [vmem:[#allocation7 + $0x248] sm:$0xff] }
 0xc48   :  { %3786 = vmatmul.mubr.msk.bf16.vlgmr.msra.gmra.mrb[48].mxu1 %vm265_vm2, %v1799_v27  ;;  %v1934_v27 = vld [vmem:[#allocation7 + $0x220] sm:$0xff] }
 0xc49   :  { %2254 = vmatprep.mubr.bf16.mxu1 %v4135_v0  ;;  %2223 = vmatpush1.bf16.msra.mxu1 %v3595_v48  ;;  %v1941_v48 = vld [vmem:[#allocation7 + $0x258] sm:$0xff] }
 0xd1b   :  { %v1840_v51 = vpop.f32.mrb[48].mxu1 }
 0xd1c   :  { %v1846_v4 = vpack.c.bf16 %v1840_v51, %v1840_v51  ;;  %v3787_v6 = vpop.f32.mrb[49].mxu1  ;;  %v3598_v51 = vcombine.high %v1931_v57, %v1939_v58 }
 0xd1d   :  { %v1843_v8 = vpop.f32.mrb[50].mxu1  ;;  %v3597_v6 = vcombine.low %v1931_v57, %v1939_v58 }
 0xd1e   :  { %v3788_v10 = vpop.f32.mrb[51].mxu1  ;;  %3794 = vmatmul.mubr.bf16.vlgmr.msra.gmra.mrb[48].mxu0 %v1846_v4  ;;  %v1942_v4 = vld [vmem:[#allocation7 + $0x260] sm:$0xff] }
 0xd1f   :  { %2336 = vmatprep.mubr.bf16.mxu0 %v4135_v0  ;;  %2305 = vmatpush1.bf16.msra.mxu0 %v3599_v29  ;;  %v3603_v8 = vcombine.low %v1934_v27, %v1942_v4  ;;  %v3604_v10 = vcombine.high %v1934_v27, %v1942_v4  ;;  %v1936_v29 = vld [vmem:[#allocation7 + $0x230] sm:$0xff]  ;;  %v1943_v4 = vld [vmem:[#allocation7 + $0x268] sm:$0xff] }
 0xd20   :  { %2306 = vmatprep.subr.bf16.mxu0 %v3616_v53  ;;  %v3608_v38 = vcombine.high %v1936_v29, %v1944_v32  ;;  %v3601_v53 = vcombine.low %v1933_v30, %v1941_v48  ;;  %v3607_v57 = vcombine.low %v1936_v29, %v1944_v32  ;;  %v1978_v32 = vld [vmem:[#allocation7 + $0x380] sm:$0xff] }
 0xd23   :  { %2307 = vmatpush1.bf16.msra.mxu0 %v3615_v52  ;;  %v1960_v52 = vld [vmem:[#allocation7 + $0x2f0] sm:$0xff] }
 0xd24   :  { %2386 = vmatprep.subr.bf16.mxu0 %v3604_v10 }
 0xdf1   :  { %v1898_v18 = vpop.f32.mrb[48].mxu0 }
 0xdf2   :  { %v1899_v20 = vadd.f32 %v3590_v15, %v1898_v18  ;;  %v3795_v59 = vpop.f32.mrb[49].mxu0 }
 0xdf3   :  { %v1901_v21 = vpop.f32.mrb[50].mxu0 }
 0xdf4   :  { %v3796_v13 = vpop.f32.mrb[51].mxu0  ;;  %v1904_v16 = vadd.f32 %v1899_v20, %v4383_v1  ;;  %v1946_v1 = vld [vmem:[#allocation7 + $0x280] sm:$0xff]  ;;  %v3593_v21 = vld [vmem:[#allocation8 + $0xe] ss:$0 sm:$0xff] }
 0xdf5   :  { %v3612_v37 = vcombine.high %v1946_v1, %v1954_v36  ;;  %v3611_v56 = vcombine.low %v1946_v1, %v1954_v36  ;;  %v3602_v36 = vcombine.high %v1933_v30, %v1941_v48 }
 0xdf6   :  { %v1907_v43 = vsel %vm118_vm0, %v1904_v16, 0.0 }
 0xdf7   :  { %1908 = vadd.xlane.f32.xlu0 %v1907_v43  ;;  %2224 = vmatprep.subr.bf16.mxu1 %v3612_v37  ;;  %v1949_v37 = vld [vmem:[#allocation7 + $0x298] sm:$0xff] }
 0xdf8   :  { %2225 = vmatpush1.bf16.msra.mxu1 %v3611_v56  ;;  %v1952_v56 = vld [vmem:[#allocation7 + $0x2b0] sm:$0xff]  ;;  %v3618_v58 = vcombine.high %v1949_v37, %v1957_v50  ;;  %v3617_v10 = vcombine.low %v1949_v37, %v1957_v50 }
 0xdf9   :  { %2263 = vmatprep.subr.bf16.mxu1 %v3598_v51  ;;  %v3624_v27 = vcombine.high %v1952_v56, %v1960_v52  ;;  %v1935_v51 = vld [vmem:[#allocation7 + $0x228] sm:$0xff] }
 0xe84   :  { %v1909_v14 = vpop.xlane.xlu0 %1908 }
 0xe85   :  { %v1910_v17 = vmul.f32 0.03125, %v1909_v14  ;;  %v1947_v14 = vld [vmem:[#allocation7 + $0x288] sm:$0xff] }
 0xe87   :  { %v1911_v33 = vsub.f32 %v1904_v16, %v1910_v17  ;;  %v3594_v16 = vld [vmem:[#allocation8 + $0xf] ss:$0 sm:$0xff] }
 0xe88   :  { %v1955_v17 = vld [vmem:[#allocation7 + $0x2c8] sm:$0xff] }
 0xe89   :  { %v1912_v63 = vmul.f32 %v1911_v33, %v1911_v33  ;;  %v3614_v26 = vcombine.high %v1947_v14, %v1955_v17 }
 0xe8b   :  { %v1913_v5 = vsel %vm118_vm0, %v1912_v63, 0.0  ;;  %v1950_v63 = vld [vmem:[#allocation7 + $0x2a0] sm:$0xff] }
 0xe8c   :  { %1914 = vadd.xlane.f32.xlu1 %v1913_v5  ;;  %v1958_v5 = vld [vmem:[#allocation7 + $0x2e0] sm:$0xff] }
 0xe8d   :  { %v3620_v28 = vcombine.high %v1950_v63, %v1958_v5  ;;  %v3619_v1 = vcombine.low %v1950_v63, %v1958_v5 }
 0xf19   :  { %v1915_v15 = vpop.xlane.xlu1 %1914 }
 0xf1a   :  { %v1916_v18 = vmul.f32 0.03125, %v1915_v15  ;;  %v3623_v15 = vcombine.low %v1952_v56, %v1960_v52  ;;  %v1979_v52 = vld [vmem:[#allocation7 + $0x388] sm:$0xff] }
 0xf1c   :  { %v1917_v20 = vadd.f32 1e-05, %v1916_v18  ;;  %v3606_v18 = vcombine.high %v1935_v51, %v1943_v4 }
 0xf1e   :  { %3996 = vrsqrt.f32 %v1917_v20 }
 0xf28   :  { %v3997_v59 = vpop.eup %3996 }
 0xf29   :  { %v1919_v13 = vmul.f32 %v3997_v59, %v1911_v33  ;;  %v3613_v33 = vcombine.low %v1947_v14, %v1955_v17  ;;  %v1951_v59 = vld [vmem:[#allocation7 + $0x2a8] sm:$0xff]  ;;  %v1945_v14 = vld [vmem:[#allocation7 + $0x278] sm:$0xff] }
 0xf2b   :  { %v1924_v43 = vmul.f32 %v3593_v21, %v1919_v13  ;;  %v1959_v21 = vld [vmem:[#allocation7 + $0x2e8] sm:$0xff]  ;;  %v3605_v13 = vcombine.low %v1935_v51, %v1943_v4  ;;  %v4434_v4 = vld [vmem:[#allocation7 + $0x318] sm:$0xff] }
 0xf2c   :  { %v3621_v17 = vcombine.low %v1951_v59, %v1959_v21 }
 0xf2d   :  { %v4406_v22 = vadd.f32 %v3594_v16, %v1924_v43  ;;  %v3622_v16 = vcombine.high %v1951_v59, %v1959_v21  ;;  %v1937_v43 = vld [vmem:[#allocation7 + $0x238] sm:$0xff] }
 0xf2e   :  { %v3610_v63 = vcombine.high %v1937_v43, %v1945_v14  ;;  %v3609_v30 = vcombine.low %v1937_v43, %v1945_v14 }
 0xf2f   :  { %v4410_v25 = vpack.c.bf16 %v4406_v22, %v4406_v22 }
 0xf31   :  { %3627 = vmatmul.mubr.msk.bf16.vlgmr.msra.gmra.mrb[52].mxu1 %vm118_vm0, %v4410_v25  ;;  %3629 = vmatmul.mubr.msk.bf16.vlgmr.msra.gmra.mrb[52].mxu0 %vm118_vm0, %v4410_v25 }
 0xf32   :  { %2264 = vmatpush1.bf16.msra.mxu1 %v3597_v6  ;;  %2387 = vmatpush1.bf16.msra.mxu0 %v3603_v8  ;;  %v1962_v6 = vld [vmem:[#allocation7 + $0x300] sm:$0xff] }
 0xf33   :  { %2265 = vmatprep.subr.bf16.mxu1 %v3614_v26  ;;  %2388 = vmatprep.subr.bf16.mxu0 %v3620_v28  ;;  %v1970_v8 = vld [vmem:[#allocation7 + $0x340] sm:$0xff]  ;;  %v1953_v26 = vld [vmem:[#allocation7 + $0x2b8] sm:$0xff] }
 0xf34   :  { %2295 = vmatprep.mubr.bf16.mxu1 %v4135_v0  ;;  %2418 = vmatprep.mubr.bf16.mxu0 %v4135_v0  ;;  %v3637_v20 = vcombine.high %v1962_v6, %v1970_v8  ;;  %v3636_v5 = vcombine.low %v1962_v6, %v1970_v8  ;;  %v1961_v28 = vld [vmem:[#allocation7 + $0x2f8] sm:$0xff] }
 0xf35   :  { %v3626_v48 = vcombine.high %v1953_v26, %v1961_v28  ;;  %v3625_v29 = vcombine.low %v1953_v26, %v1961_v28  ;;  %v4436_v6 = vld [vmem:[#allocation7 + $0x358] sm:$0xff] }
 0xf36   :  { %2266 = vmatpush1.bf16.msra.mxu1 %v3613_v33  ;;  %2389 = vmatpush1.bf16.msra.mxu0 %v3619_v1  ;;  %v1986_v33 = vld [vmem:[#allocation7 + $0x3c0] sm:$0xff]  ;;  %v1963_v1 = vld [vmem:[#allocation7 + $0x308] sm:$0xff]  ;;  %v3642_v8 = vcombine.low %v4434_v4, %v4436_v6 }
 0xf37   :  { %2345 = vmatprep.subr.bf16.mxu1 %v3602_v36  ;;  %2468 = vmatprep.subr.bf16.mxu0 %v3608_v38  ;;  %v3653_v36 = vcombine.high %v1978_v32, %v1986_v33  ;;  %v1971_v38 = vld [vmem:[#allocation7 + $0x348] sm:$0xff]  ;;  %v3652_v37 = vcombine.low %v1978_v32, %v1986_v33 }
 0xf38   :  { %v3638_v50 = vcombine.low %v1963_v1, %v1971_v38  ;;  %v3639_v56 = vcombine.high %v1963_v1, %v1971_v38 }
 0xf39   :  { %3628 = vmatmul.mubr.msk.bf16.vlgmr.msra.gmra.mrb[56].mxu1 %vm118_vm0, %v4410_v25  ;;  %3631 = vmatmul.mubr.msk.bf16.vlgmr.msra.gmra.mrb[56].mxu0 %vm118_vm0, %v4410_v25 }
 0xf3a   :  { %2346 = vmatpush1.bf16.msra.mxu1 %v3601_v53  ;;  %2469 = vmatpush1.bf16.msra.mxu0 %v3607_v57  ;;  %v1987_v53 = vld [vmem:[#allocation7 + $0x3c8] sm:$0xff] }
 0xf3b   :  { %2347 = vmatprep.subr.bf16.mxu1 %v3618_v58  ;;  %2470 = vmatprep.subr.bf16.mxu0 %v3624_v27  ;;  %v3655_v57 = vcombine.high %v1979_v52, %v1987_v53  ;;  %v1972_v58 = vld [vmem:[#allocation7 + $0x350] sm:$0xff]  ;;  %v3654_v27 = vcombine.low %v1979_v52, %v1987_v53 }
 0xf3c   :  { %2377 = vmatprep.mubr.bf16.mxu1 %v4135_v0  ;;  %2500 = vmatprep.mubr.bf16.mxu0 %v4135_v0 }
 0xf3e   :  { %2348 = vmatpush1.bf16.msra.mxu1 %v3617_v10  ;;  %2471 = vmatpush1.bf16.msra.mxu0 %v3623_v15  ;;  %v3643_v10 = vcombine.high %v4434_v4, %v4436_v6  ;;  %v4443_v15 = vsub.s32 1, %v4279_v39 }
 0xf3f   :  { %2427 = vmatprep.subr.bf16.mxu1 %v3606_v18  ;;  %2747 = vmatprep.subr.bf16.mxu0 %v3637_v20 }
 0xf40   :  { %v1998_v18 = vrot.slane %v482_v42, %v4443_v15  ;;  %v2002_v20 = vrot.slane %v483_v44, %v4443_v15  ;;  %v2018_v59 = vrot.slane %v487_v45, %v4443_v15  ;;  %v1988_v44 = vld [vmem:[#allocation7 + $0x3d0] sm:$0xff]  ;;  %v2006_v45 = vrot.slane %v484_v55, %v4443_v15 }
 0xf41   :  { %3630 = vmatmul.mubr.msk.bf16.vlgmr.msra.gmra.mrb[60].mxu1 %vm118_vm0, %v4410_v25  ;;  %3633 = vmatmul.mubr.msk.bf16.vlgmr.msra.gmra.mrb[60].mxu0 %vm118_vm0, %v4410_v25  ;;  %v2010_v32 = vrot.slane %v485_v60, %v4443_v15  ;;  %v3657_v1 = vcombine.high %v1980_v40, %v1988_v44  ;;  %v2014_v49 = vrot.slane %v486_v11, %v4443_v15 }
 0xf42   :  { %2428 = vmatpush1.bf16.msra.mxu1 %v3605_v13  ;;  %2459 = vmatprep.mubr.bf16.mxu1 %v4135_v0  ;;  %v2026_v41 = vrot.slane %v489_v24, %v4443_v15  ;;  %v2054_v34 = vrot.slane %v496_v2, %v4443_v15  ;;  %v4138_v2 = vmov 0.0|0.0  }
 0xf43   :  { %2429 = vmatprep.subr.bf16.mxu1 %v3622_v16 }
 0xf46   :  { %2430 = vmatpush1.bf16.msra.mxu1 %v3621_v17 }
 0xf47   :  { %2509 = vmatprep.subr.bf16.mxu1 %v3610_v63  ;;  %2748 = vmatpush1.bf16.xpose.msra.mxu0 %v3636_v5 }
 0xf48   :  { %2749 = vmatprep.subr.bf16.mxu0 %v3653_v36 }
 0xf49   :  { %3632 = vmatmul.mubr.msk.bf16.vlgmr.msra.gmra.mrb[64].mxu1 %vm118_vm0, %v4410_v25 }
 0xf4a   :  { %2510 = vmatpush1.bf16.msra.mxu1 %v3609_v30  ;;  %2541 = vmatprep.mubr.bf16.mxu1 %v4135_v0  ;;  %v1964_v0 = vld [vmem:[#allocation7 + $0x310] sm:$0xff] }
 0xf4b   :  { %2511 = vmatprep.subr.bf16.mxu1 %v3626_v48  ;;  %v3640_v51 = vcombine.low %v1964_v0, %v1972_v58 }
 0xf4e   :  { %2512 = vmatpush1.bf16.msra.mxu1 %v3625_v29 }
 0xf4f   :  { %2787 = vmatprep.subr.bf16.mxu1 %v3639_v56  ;;  %2750 = vmatpush1.bf16.xpose.msra.mxu0 %v3652_v37 }
 0xf51   :  { %3634 = vmatmul.mubr.msk.bf16.vlgmr.msra.gmra.mrb[68].mxu1 %vm118_vm0, %v4410_v25  ;;  %v3641_v25 = vcombine.high %v1964_v0, %v1972_v58 }
 0xf53   :  { %2827 = vmatprep.subr.bf16.mxu0 %v3641_v25 }
 0xf57   :  { %2788 = vmatpush1.bf16.xpose.msra.mxu1 %v3638_v50 }
 0xf58   :  { %2789 = vmatprep.subr.bf16.mxu1 %v3655_v57 }
 0xf5f   :  { %2790 = vmatpush1.bf16.xpose.msra.mxu1 %v3654_v27  ;;  %v1981_v27 = vld [vmem:[#allocation7 + $0x398] sm:$0xff] }
 0xf60   :  { %2867 = vmatprep.subr.bf16.mxu1 %v3643_v10  ;;  %v1989_v10 = vld [vmem:[#allocation7 + $0x3d8] sm:$0xff] }
 0xf61   :  { %v3658_v4 = vcombine.low %v1981_v27, %v1989_v10 }
0x1004   :  { %v2256_v21 = vpop.f32.mrb[52].mxu1  ;;  %v2338_v13 = vpop.f32.mrb[52].mxu0 }
0x1005   :  { %v2257_v16 = vadd.f32 %v2256_v21, %v1998_v18  ;;  %v2258_v43 = vpop.f32.mrb[53].mxu1  ;;  %v2340_v14 = vpop.f32.mrb[53].mxu0  ;;  %v1966_v18 = vld [vmem:[#allocation7 + $0x320] sm:$0xff]  ;;  %v3656_v21 = vcombine.low %v1980_v40, %v1988_v44  ;;  %v2339_v11 = vadd.f32 %v2338_v13, %v2014_v49 }
0x1006   :  { %v2259_v17 = vadd.f32 %v2258_v43, %v2002_v20  ;;  %v2341_v39 = vadd.f32 %v2340_v14, %v2018_v59  ;;  %v2260_v63 = vpop.f32.mrb[54].mxu1  ;;  %v2342_v5 = vpop.f32.mrb[54].mxu0  ;;  %v1974_v20 = vld [vmem:[#allocation7 + $0x360] sm:$0xff]  ;;  %v3659_v43 = vcombine.high %v1981_v27, %v1989_v10  ;;  %v2050_v27 = vrot.slane %v495_v31, %v4443_v15  ;;  %v1976_v10 = vld [vmem:[#allocation7 + $0x370] sm:$0xff] }
0x1007   :  { %v2550_v26 = vmax.f32 %v2257_v16, 0.0  ;;  %v2261_v28 = vpop.f32.mrb[55].mxu1  ;;  %v2343_v42 = vpop.f32.mrb[55].mxu0  ;;  %v3645_v14 = vcombine.high %v1966_v18, %v1974_v20  ;;  %v2554_v13 = vmax.f32 %v2339_v11, 0.0  ;;  %v1982_v44 = vld [vmem:[#allocation7 + $0x3a0] sm:$0xff]  ;;  %v3644_v6 = vcombine.low %v1966_v18, %v1974_v20 }
0x1008   :  { %v2551_v30 = vmax.f32 %v2259_v17, 0.0  ;;  %v2555_v48 = vmax.f32 %v2341_v39, 0.0  ;;  %v2022_v42 = vrot.slane %v488_v47, %v4443_v15  ;;  %v2038_v31 = vrot.slane %v492_v61, %v4443_v15 }
0x1009   :  { %v2566_v33 = vpack.c.bf16 %v2550_v26, %v2550_v26 }
0x100a   :  { %v2567_v29 = vpack.c.bf16 %v2551_v30, %v2551_v30  ;;  %v2571_v36 = vpack.c.bf16 %v2555_v48, %v2555_v48 }
0x100c   :  { %v2297_v38 = vpop.f32.mrb[56].mxu1  ;;  %v4460_v37 = vpop.f32.mrb[56].mxu0  ;;  %2779 = vmatprep.mubr.bf16.mxu0 %v2567_v29 }
0x100d   :  { %v2298_v50 = vadd.f32 %v2297_v38, %v2006_v45  ;;  %v2299_v56 = vpop.f32.mrb[57].mxu1  ;;  %v2422_v52 = vpop.f32.mrb[57].mxu0  ;;  %2780 = vmatmul.mubr.bf16.vlgmr.msra.gmra.mrb[64].mxu0 %v2566_v33  ;;  %v1990_v45 = vld [vmem:[#allocation7 + $0x3e0] sm:$0xff]  ;;  %v1975_v33 = vld [vmem:[#allocation7 + $0x368] sm:$0xff] }
0x100e   :  { %v2300_v53 = vadd.f32 %v2299_v56, %v2010_v32  ;;  %2828 = vmatpush1.bf16.xpose.msra.mxu0 %v3640_v51  ;;  %v2301_v0 = vpop.f32.mrb[58].mxu1  ;;  %v2424_v55 = vpop.f32.mrb[58].mxu0  ;;  %2859 = vmatprep.mubr.bf16.mxu0 %v2571_v36  ;;  %v2034_v51 = vrot.slane %v491_v19, %v4443_v15  ;;  %v1967_v32 = vld [vmem:[#allocation7 + $0x328] sm:$0xff]  ;;  %v2570_v36 = vpack.c.bf16 %v2554_v13, %v2554_v13 }
0x100f   :  { %v2552_v60 = vmax.f32 %v2298_v50, 0.0  ;;  %v2302_v57 = vpop.f32.mrb[59].mxu1  ;;  %v2425_v58 = vpop.f32.mrb[59].mxu0  ;;  %2829 = vmatprep.subr.bf16.mxu0 %v3657_v1  ;;  %v3661_v47 = vcombine.high %v1982_v44, %v1990_v45  ;;  %v3647_v50 = vcombine.high %v1967_v32, %v1975_v33  ;;  %v2030_v55 = vrot.slane %v490_v23, %v4443_v15 }
0x1010   :  { %v2553_v25 = vmax.f32 %v2300_v53, 0.0  ;;  %v2423_v63 = vadd.f32 %v2422_v52, %v2034_v51  ;;  %v1983_v57 = vld [vmem:[#allocation7 + $0x3a8] sm:$0xff]  ;;  %v3660_v18 = vcombine.low %v1982_v44, %v1990_v45  ;;  %v3646_v20 = vcombine.low %v1967_v32, %v1975_v33 }
0x1011   :  { %v2568_v16 = vpack.c.bf16 %v2552_v60, %v2552_v60  ;;  %v1991_v58 = vld [vmem:[#allocation7 + $0x3e8] sm:$0xff]  ;;  %v2421_v51 = vadd.f32 %v4460_v37, %v2030_v55  ;;  %v1984_v37 = vld [vmem:[#allocation7 + $0x3b0] sm:$0xff]  ;;  %v2046_v44 = vrot.slane %v494_v46, %v4443_v15  ;;  %v4006_v55 = vld [vmem:[#allocation2] sm:$0xff] }
0x1012   :  { %v2569_v59 = vpack.c.bf16 %v2553_v25, %v2553_v25  ;;  %v2559_v29 = vmax.f32 %v2423_v63, 0.0  ;;  %v1968_v25 = vld [vmem:[#allocation7 + $0x330] sm:$0xff] }
0x1013   :  { %v1992_v63 = vld [vmem:[#allocation7 + $0x3f0] sm:$0xff]  ;;  %v3648_v13 = vcombine.low %v1968_v25, %v1976_v10 }
0x1014   :  { %v2379_v17 = vpop.f32.mrb[60].mxu1  ;;  %v4471_v39 = vpop.f32.mrb[60].mxu0  ;;  %2819 = vmatprep.mubr.bf16.mxu1 %v2569_v59  ;;  %v2575_v56 = vpack.c.bf16 %v2559_v29, %v2559_v29  ;;  %v3663_v59 = vcombine.high %v1983_v57, %v1991_v58  ;;  %v1993_v29 = vld [vmem:[#allocation7 + $0x3f8] sm:$0xff]  ;;  %v3664_v33 = vcombine.low %v1984_v37, %v1992_v63 }
0x1015   :  { %v2381_v5 = vpop.f32.mrb[61].mxu1  ;;  %v2504_v26 = vpop.f32.mrb[61].mxu0  ;;  %2820 = vmatmul.mubr.bf16.vlgmr.msra.gmra.mrb[72].mxu1 %v2568_v16  ;;  %v2380_v12 = vadd.f32 %v2379_v17, %v2022_v42 }
0x1016   :  { %v2382_v28 = vadd.f32 %v2381_v5, %v2026_v41  ;;  %2830 = vmatpush1.bf16.xpose.msra.mxu0 %v3656_v21  ;;  %2868 = vmatpush1.bf16.xpose.msra.mxu1 %v3642_v8  ;;  %v2383_v19 = vpop.f32.mrb[62].mxu1  ;;  %v2506_v24 = vpop.f32.mrb[62].mxu0  ;;  %v2042_v8 = vrot.slane %v493_v3, %v4443_v15  ;;  %v3649_v41 = vcombine.high %v1968_v25, %v1976_v10 }
0x1017   :  { %v2384_v30 = vpop.f32.mrb[63].mxu1  ;;  %v2507_v48 = vpop.f32.mrb[63].mxu0  ;;  %2869 = vmatprep.subr.bf16.mxu1 %v3659_v43  ;;  %2907 = vmatprep.subr.bf16.mxu0 %v3645_v14  ;;  %v2556_v49 = vmax.f32 %v2380_v12, 0.0  ;;  %v2505_v11 = vadd.f32 %v2504_v26, %v2050_v27  ;;  %v2558_v14 = vmax.f32 %v2421_v51, 0.0  ;;  %v2058_v26 = vrot.slane %v497_v35, %v4443_v15  ;;  %v1977_v19 = vld [vmem:[#allocation7 + $0x378] sm:$0xff] }
0x1018   :  { %v2557_v40 = vmax.f32 %v2382_v28, 0.0  ;;  %v1969_v28 = vld [vmem:[#allocation7 + $0x338] sm:$0xff]  ;;  %v3662_v24 = vcombine.low %v1983_v57, %v1991_v58  ;;  %v3665_v48 = vcombine.high %v1984_v37, %v1992_v63  ;;  %v3635_v58 = vld [vmem:[#allocation8 + $0xd] ss:$0 sm:$0xff] }
0x1019   :  { %v2572_v9 = vpack.c.bf16 %v2556_v49, %v2556_v49  ;;  %v2563_v5 = vmax.f32 %v2505_v11, 0.0  ;;  %v2574_v42 = vpack.c.bf16 %v2558_v14, %v2558_v14  ;;  %v3651_v54 = vcombine.high %v1969_v28, %v1977_v19  ;;  %v1985_v35 = vld [vmem:[#allocation7 + $0x3b8] sm:$0xff] }
0x101a   :  { %v2573_v1 = vpack.c.bf16 %v2557_v40, %v2557_v40  ;;  %v3666_v46 = vcombine.low %v1985_v35, %v1993_v29 }
0x101b   :  { %v2579_v61 = vpack.c.bf16 %v2563_v5, %v2563_v5 }
0x101c   :  { %v2461_v38 = vpop.f32.mrb[64].mxu1  ;;  %2899 = vmatprep.mubr.bf16.mxu1 %v2573_v1  ;;  %v3650_v1 = vcombine.low %v1969_v28, %v1977_v19 }
0x101d   :  { %2860 = vmatmul.mubr.bf16.vlgmr.msra.gmra.mrb[68].mxu0 %v2570_v36  ;;  %v2463_v52 = vpop.f32.mrb[65].mxu1  ;;  %v2462_v30 = vadd.f32 %v2461_v38, %v2038_v31 }
0x101e   :  { %v2464_v53 = vadd.f32 %v2463_v52, %v2042_v8  ;;  %2870 = vmatpush1.bf16.xpose.msra.mxu1 %v3658_v4  ;;  %2908 = vmatpush1.bf16.xpose.msra.mxu0 %v3644_v6  ;;  %v2465_v0 = vpop.f32.mrb[66].mxu1  ;;  %v2503_v4 = vadd.f32 %v4471_v39, %v2046_v44  ;;  %v3667_v8 = vcombine.high %v1985_v35, %v1993_v29  ;;  %v3177_v52 = vld [vmem:[#allocation8 + $0x40] sm:$0xff] }
0x101f   :  { %2939 = vmatprep.mubr.bf16.mxu0 %v2575_v56  ;;  %v2466_v3 = vpop.f32.mrb[67].mxu1  ;;  %2909 = vmatprep.subr.bf16.mxu0 %v3661_v47  ;;  %v2560_v45 = vmax.f32 %v2462_v30, 0.0  ;;  %v3176_v56 = vld [vmem:[#allocation8 + $0x38] sm:$0xff] }
0x1020   :  { %v2561_v60 = vmax.f32 %v2464_v53, 0.0  ;;  %2947 = vmatprep.subr.bf16.mxu1 %v3647_v50  ;;  %v2562_v12 = vmax.f32 %v2503_v4, 0.0  ;;  %v3896_v15 = vpack.c.bf16 %v3177_v52, %v3176_v56  ;;  %v3179_v53 = vld [vmem:[#allocation8 + $0x50] sm:$0xff] }
0x1021   :  { %v2576_v6 = vpack.c.bf16 %v2560_v45, %v2560_v45  ;;  %v3899_v0 = vpack.c.bf16 %v3179_v53, %v3178_v62 }
0x1022   :  { %v2577_v23 = vpack.c.bf16 %v2561_v60, %v2561_v60  ;;  %v2578_v47 = vpack.c.bf16 %v2562_v12, %v2562_v12 }
0x1024   :  { %v2543_v21 = vpop.f32.mrb[68].mxu1 }
0x1025   :  { %2900 = vmatmul.mubr.bf16.vlgmr.msra.gmra.mrb[76].mxu1 %v2572_v9  ;;  %v2545_v16 = vpop.f32.mrb[69].mxu1  ;;  %v2544_v38 = vadd.f32 %v2543_v21, %v2054_v34  ;;  %v3093_v34 = vld [vmem:[#allocation8 + $0x18] sm:$0xff] }
0x1026   :  { %2910 = vmatpush1.bf16.xpose.msra.mxu0 %v3660_v18  ;;  %2948 = vmatpush1.bf16.xpose.msra.mxu1 %v3646_v20  ;;  %v2547_v43 = vpop.f32.mrb[70].mxu1  ;;  %v2546_v40 = vadd.f32 %v2545_v16, %v2058_v26 }
0x1027   :  { %2979 = vmatprep.mubr.bf16.mxu1 %v2577_v23  ;;  %v2548_v17 = vpop.f32.mrb[71].mxu1  ;;  %2949 = vmatprep.subr.bf16.mxu1 %v3663_v59  ;;  %v2564_v39 = vmax.f32 %v2544_v38, 0.0  ;;  %v3095_v38 = vld [vmem:[#allocation8 + $0x28] sm:$0xff] }
0x1028   :  { %2987 = vmatprep.subr.bf16.mxu0 %v3649_v41  ;;  %v2565_v32 = vmax.f32 %v2546_v40, 0.0 }
0x1029   :  { %v2580_v50 = vpack.c.bf16 %v2564_v39, %v2564_v39  ;;  %v3096_v39 = vld [vmem:[#allocation8 + $0x30] sm:$0xff] }
0x102a   :  { %v2581_v36 = vpack.c.bf16 %v2565_v32, %v2565_v32 }
0x102d   :  { %2940 = vmatmul.mubr.bf16.vlgmr.msra.gmra.mrb[72].mxu0 %v2574_v42 }
0x102e   :  { %2950 = vmatpush1.bf16.xpose.msra.mxu1 %v3662_v24  ;;  %2988 = vmatpush1.bf16.xpose.msra.mxu0 %v3648_v13 }
0x102f   :  { %3019 = vmatprep.mubr.bf16.mxu0 %v2579_v61  ;;  %2989 = vmatprep.subr.bf16.mxu0 %v3665_v48 }
0x1030   :  { %3027 = vmatprep.subr.bf16.mxu1 %v3651_v54 }
0x1035   :  { %2980 = vmatmul.mubr.bf16.vlgmr.msra.gmra.mrb[80].mxu1 %v2576_v6 }
0x1036   :  { %2990 = vmatpush1.bf16.xpose.msra.mxu0 %v3664_v33  ;;  %3028 = vmatpush1.bf16.xpose.msra.mxu1 %v3650_v1 }
0x1037   :  { %3059 = vmatprep.mubr.bf16.mxu1 %v2581_v36  ;;  %3029 = vmatprep.subr.bf16.mxu1 %v3667_v8 }
0x1038   :  { %3889 = vmatprep.subr.bf16.mxu0 %v4138_v2 }
0x103d   :  { %3020 = vmatmul.mubr.bf16.vlgmr.msra.gmra.mrb[76].mxu0 %v2578_v47 }
0x103e   :  { %3030 = vmatpush1.bf16.xpose.msra.mxu1 %v3666_v46  ;;  %3805 = vmatprep.mubr.msk.f32.mxu0 %vm4137_vm1, %v4136_v7  ;;  %v3094_v46 = vld [vmem:[#allocation8 + $0x20] sm:$0xff] }
0x103f   :  { %3895 = vmatprep.subr.bf16.mxu1 %v4138_v2  ;;  %v3890_v47 = vpack.c.bf16 %v3094_v46, %v3093_v34  ;;  %v3364_v34 = vld [vmem:[#allocation8 + $0x140] sm:$0xff] }
0x1041   :  { %3891 = vmatpush3.bf16.msra.mxu0 %v3890_v47  ;;  %v3365_v47 = vld [vmem:[#allocation8 + $0x148] sm:$0xff] }
0x1042   :  { %3892 = vmatprep.subr.bf16.mxu0 %v4138_v2 }
0x1045   :  { %3060 = vmatmul.mubr.bf16.vlgmr.msra.gmra.mrb[84].mxu1 %v2580_v50  ;;  %v3893_v50 = vpack.c.bf16 %v3096_v39, %v3095_v38  ;;  %v3366_v38 = vld [vmem:[#allocation8 + $0x150] sm:$0xff] }
0x1046   :  { %3816 = vmatprep.mubr.msk.f32.mxu1 %vm4137_vm1, %v4136_v7  ;;  %3897 = vmatpush3.bf16.msra.mxu1 %v3896_v15  ;;  %v3947_v39 = vpack.c.bf16 %v3366_v38, %v3365_v47 }
0x1047   :  { %3898 = vmatprep.subr.bf16.mxu1 %v4138_v2  ;;  %3894 = vmatpush3.bf16.msra.mxu0 %v3893_v50  ;;  %v3670_v50 = vld [vmem:[#allocation8 + $0x12] ss:$0 sm:$0xff] }
0x1048   :  { %3901 = vmatprep.subr.bf16.mxu0 %v4138_v2 }
0x104a   :  { %3900 = vmatpush3.bf16.msra.mxu1 %v3899_v0  ;;  %v3668_v0 = vld [vmem:[#allocation8 + $0x10] ss:$0 sm:$0xff] }
0x104b   :  { %3925 = vmatprep.subr.bf16.mxu1 %v4138_v2 }
0x104d   :  { %3817 = vmatmul.mubr.msk.f32.vlgmr.msra.gmra.mrb[88].mxu1 %vm118_vm0, %v4006_v55 }
0x104e   :  { %3886 = vmatprep.mubr.msk.f32.mxu1 %vm4137_vm1, %v4136_v7 }
0x10e0   :  { %v2781_v49 = vpop.f32.mrb[64].mxu0 }
0x10e1   :  { %v2783_v3 = vpop.f32.mrb[65].mxu0  ;;  %v2782_v27 = vadd.f32 %v3635_v58, %v2781_v49  ;;  %v3259_v49 = vld [vmem:[#allocation8 + $0x58] sm:$0xff] }
0x10e2   :  { %v2784_v60 = vpop.f32.mrb[66].mxu0  ;;  %v3260_v3 = vld [vmem:[#allocation8 + $0x60] sm:$0xff] }
0x10e3   :  { %v2785_v57 = vpop.f32.mrb[67].mxu0  ;;  %v3669_v60 = vld [vmem:[#allocation8 + $0x11] ss:$0 sm:$0xff]  ;;  %v3902_v58 = vpack.c.bf16 %v3260_v3, %v3259_v49 }
0x10e8   :  { %v2821_v25 = vpop.f32.mrb[72].mxu1 }
0x10e9   :  { %v2822_v10 = vadd.f32 %v2821_v25, %v2782_v27  ;;  %v2823_v18 = vpop.f32.mrb[73].mxu1  ;;  %v3261_v25 = vld [vmem:[#allocation8 + $0x68] sm:$0xff] }
0x10ea   :  { %v2824_v20 = vpop.f32.mrb[74].mxu1 }
0x10eb   :  { %v2825_v51 = vpop.f32.mrb[75].mxu1  ;;  %v3263_v20 = vld [vmem:[#allocation8 + $0x78] sm:$0xff] }
0x10ec   :  { %v3264_v51 = vld [vmem:[#allocation8 + $0x80] sm:$0xff] }
0x10f0   :  { %v2861_v9 = vpop.f32.mrb[68].mxu0 }
0x10f1   :  { %v2862_v23 = vadd.f32 %v2861_v9, %v2822_v10  ;;  %v2863_v59 = vpop.f32.mrb[69].mxu0  ;;  %v3262_v10 = vld [vmem:[#allocation8 + $0x70] sm:$0xff]  ;;  %v3908_v9 = vpack.c.bf16 %v3264_v51, %v3263_v20 }
0x10f2   :  { %v2864_v21 = vpop.f32.mrb[70].mxu0  ;;  %v3905_v18 = vpack.c.bf16 %v3262_v10, %v3261_v25  ;;  %v3266_v59 = vld [vmem:[#allocation8 + $0x90] sm:$0xff] }
0x10f3   :  { %v2865_v41 = vpop.f32.mrb[71].mxu0 }
0x10f4   :  { %v3267_v41 = vld [vmem:[#allocation8 + $0x98] sm:$0xff] }
0x10f8   :  { %v2901_v11 = vpop.f32.mrb[76].mxu1 }
0x10f9   :  { %v2902_v16 = vadd.f32 %v2901_v11, %v2862_v23  ;;  %v2903_v43 = vpop.f32.mrb[77].mxu1  ;;  %v3265_v23 = vld [vmem:[#allocation8 + $0x88] sm:$0xff]  ;;  %v3268_v11 = vld [vmem:[#allocation8 + $0xa0] sm:$0xff] }
0x10fa   :  { %v2904_v14 = vpop.f32.mrb[78].mxu1  ;;  %v3911_v21 = vpack.c.bf16 %v3266_v59, %v3265_v23  ;;  %v3270_v43 = vld [vmem:[#allocation8 + $0xb0] sm:$0xff] }
0x10fb   :  { %v2905_v31 = vpop.f32.mrb[79].mxu1 }
0x10fc   :  { %v3271_v31 = vld [vmem:[#allocation8 + $0xb8] sm:$0xff] }
0x1100   :  { %v2941_v17 = vpop.f32.mrb[72].mxu0 }
0x1101   :  { %v2942_v37 = vadd.f32 %v2941_v17, %v2902_v16  ;;  %v2943_v63 = vpop.f32.mrb[73].mxu0  ;;  %v3914_v16 = vpack.c.bf16 %v3268_v11, %v3267_v41  ;;  %v3272_v17 = vld [vmem:[#allocation8 + $0xc0] sm:$0xff] }
0x1102   :  { %v2944_v5 = vpop.f32.mrb[74].mxu0  ;;  %v3672_v63 = vld [vmem:[#allocation8 + $0x13] ss:$0 sm:$0xff] }
0x1103   :  { %v2945_v26 = vpop.f32.mrb[75].mxu0  ;;  %v3273_v5 = vld [vmem:[#allocation8 + $0xc8] sm:$0xff] }
0x1104   :  { %v3274_v26 = vld [vmem:[#allocation8 + $0xd0] sm:$0xff] }
0x1108   :  { %v2981_v28 = vpop.f32.mrb[80].mxu1 }
0x1109   :  { %v2982_v19 = vadd.f32 %v2981_v28, %v2942_v37  ;;  %v2983_v24 = vpop.f32.mrb[81].mxu1  ;;  %v3920_v37 = vpack.c.bf16 %v3272_v17, %v3271_v31 }
0x110a   :  { %v2984_v13 = vpop.f32.mrb[82].mxu1 }
0x110b   :  { %v2985_v42 = vpop.f32.mrb[83].mxu1  ;;  %v3351_v13 = vld [vmem:[#allocation8 + $0xd8] sm:$0xff] }
0x110c   :  { %v3352_v42 = vld [vmem:[#allocation8 + $0xe0] sm:$0xff] }
0x1110   :  { %v3021_v30 = vpop.f32.mrb[76].mxu0 }
0x1111   :  { %v3022_v48 = vadd.f32 %v3021_v30, %v2982_v19  ;;  %v3023_v54 = vpop.f32.mrb[77].mxu0  ;;  %v3923_v19 = vpack.c.bf16 %v3274_v26, %v3273_v5  ;;  %v3926_v30 = vpack.c.bf16 %v3352_v42, %v3351_v13 }
0x1112   :  { %v3024_v61 = vpop.f32.mrb[78].mxu0  ;;  %v3354_v54 = vld [vmem:[#allocation8 + $0xf0] sm:$0xff] }
0x1113   :  { %v3025_v40 = vpop.f32.mrb[79].mxu0  ;;  %3927 = vmatpush3.bf16.msra.mxu1 %v3926_v30  ;;  %v3355_v61 = vld [vmem:[#allocation8 + $0xf8] sm:$0xff] }
0x1114   :  { %3928 = vmatprep.subr.bf16.mxu1 %v4138_v2 }
0x1118   :  { %v3061_v44 = vpop.f32.mrb[84].mxu1 }
0x1119   :  { %v3062_v45 = vadd.f32 %v3061_v44, %v3022_v48  ;;  %v3063_v35 = vpop.f32.mrb[85].mxu1  ;;  %v3353_v48 = vld [vmem:[#allocation8 + $0xe8] sm:$0xff]  ;;  %v3356_v44 = vld [vmem:[#allocation8 + $0x100] sm:$0xff] }
0x111a   :  { %v3064_v29 = vpop.f32.mrb[86].mxu1  ;;  %v3929_v40 = vpack.c.bf16 %v3354_v54, %v3353_v48  ;;  %v3357_v35 = vld [vmem:[#allocation8 + $0x108] sm:$0xff] }
0x111b   :  { %v3065_v32 = vpop.f32.mrb[87].mxu1  ;;  %v3067_v33 = vadd.f32 %v3062_v45, %v4406_v22  ;;  %v3932_v45 = vpack.c.bf16 %v3356_v44, %v3355_v61  ;;  %v3358_v29 = vld [vmem:[#allocation8 + $0x110] sm:$0xff] }
0x111c   :  { %3930 = vmatpush3.bf16.msra.mxu1 %v3929_v40  ;;  %v3935_v32 = vpack.c.bf16 %v3358_v29, %v3357_v35 }
0x111d   :  { %v3070_v1 = vsel %vm118_vm0, %v3067_v33, 0.0  ;;  %3931 = vmatprep.subr.bf16.mxu1 %v4138_v2 }
0x111e   :  { %3071 = vadd.xlane.f32.xlu0 %v3070_v1  ;;  %v3360_v1 = vld [vmem:[#allocation8 + $0x120] sm:$0xff] }
0x1120   :  { %v3254_v22 = vpop.f32.mrb[88].mxu1  ;;  %3933 = vmatpush3.bf16.msra.mxu1 %v3932_v45 }
0x1121   :  { %v3818_v56 = vpop.f32.mrb[89].mxu1  ;;  %v3255_v28 = vadd.f32 %v3672_v63, %v3254_v22  ;;  %3934 = vmatprep.subr.bf16.mxu1 %v4138_v2 }
0x1123   :  { %v3258_v24 = vmax.f32 %v3255_v28, 0.0 }
0x1124   :  { %3936 = vmatpush3.bf16.msra.mxu1 %v3935_v32 }
0x1125   :  { %3937 = vmatprep.subr.bf16.mxu1 %v4138_v2 }
0x11ab   :  { %v3072_v4 = vpop.xlane.xlu0 %3071 }
0x11ac   :  { %v3073_v6 = vmul.f32 0.03125, %v3072_v4 }
0x11ae   :  { %v3074_v8 = vsub.f32 %v3067_v33, %v3073_v6  ;;  %v3359_v33 = vld [vmem:[#allocation8 + $0x118] sm:$0xff]  ;;  %v3361_v6 = vld [vmem:[#allocation8 + $0x128] sm:$0xff] }
0x11af   :  { %v3938_v4 = vpack.c.bf16 %v3360_v1, %v3359_v33 }
0x11b0   :  { %v3075_v36 = vmul.f32 %v3074_v8, %v3074_v8 }
0x11b1   :  { %3939 = vmatpush3.bf16.msra.mxu1 %v3938_v4 }
0x11b2   :  { %v3076_v12 = vsel %vm118_vm0, %v3075_v36, 0.0  ;;  %3940 = vmatprep.subr.bf16.mxu1 %v4138_v2 }
0x11b3   :  { %3077 = vadd.xlane.f32.xlu1 %v3076_v12  ;;  %v3363_v12 = vld [vmem:[#allocation8 + $0x138] sm:$0xff] }
0x11b4   :  { %v3944_v46 = vpack.c.bf16 %v3364_v34, %v3363_v12 }
0x1240   :  { %v3078_v52 = vpop.xlane.xlu1 %3077 }
0x1241   :  { %v3079_v62 = vmul.f32 0.03125, %v3078_v52 }
0x1243   :  { %v3080_v15 = vadd.f32 1e-05, %v3079_v62  ;;  %v3676_v62 = vld [vmem:[#allocation8 + $0x16] ss:$0 sm:$0xff] }
0x1245   :  { %3998 = vrsqrt.f32 %v3080_v15 }
0x124f   :  { %v3999_v53 = vpop.eup %3998 }
0x1250   :  { %v3082_v55 = vmul.f32 %v3999_v53, %v3074_v8  ;;  %v3362_v8 = vld [vmem:[#allocation8 + $0x130] sm:$0xff] }
0x1251   :  { %v3941_v36 = vpack.c.bf16 %v3362_v8, %v3361_v6 }
0x1252   :  { %v3087_v57 = vmul.f32 %v3668_v0, %v3082_v55  ;;  %v3674_v0 = vld [vmem:[#allocation8 + $0x14] ss:$0 sm:$0xff] }
0x1253   :  { %3942 = vmatpush3.bf16.msra.mxu1 %v3941_v36 }
0x1254   :  { %v3092_v27 = vadd.f32 %v3669_v60, %v3087_v57  ;;  %3943 = vmatprep.subr.bf16.mxu1 %v4138_v2  ;;  %v3675_v57 = vld [vmem:[#allocation8 + $0x15] ss:$0 sm:$0xff] }
0x1256   :  { %3806 = vmatmul.mubr.msk.f32.vlgmr.msra.gmra.mrb[80].mxu0 %vm118_vm0, %v3092_v27 }
0x1257   :  { %3903 = vmatpush3.bf16.msra.mxu0 %v3902_v58  ;;  %3851 = vmatprep.mubr.msk.f32.mxu0 %vm4137_vm1, %v4136_v7  ;;  %v3269_v7 = vld [vmem:[#allocation8 + $0xa8] sm:$0xff] }
0x1258   :  { %3904 = vmatprep.subr.bf16.mxu0 %v4138_v2  ;;  %v3917_v14 = vpack.c.bf16 %v3270_v43, %v3269_v7  ;;  %3945 = vmatpush3.bf16.msra.mxu1 %v3944_v46 }
0x1259   :  { %3946 = vmatprep.subr.bf16.mxu1 %v4138_v2 }
0x125b   :  { %3906 = vmatpush3.bf16.msra.mxu0 %v3905_v18 }
0x125c   :  { %3907 = vmatprep.subr.bf16.mxu0 %v4138_v2  ;;  %3948 = vmatpush3.bf16.msra.mxu1 %v3947_v39 }
0x125f   :  { %3909 = vmatpush3.bf16.msra.mxu0 %v3908_v9 }
0x1260   :  { %3910 = vmatprep.subr.bf16.mxu0 %v4138_v2 }
0x1263   :  { %3912 = vmatpush3.bf16.msra.mxu0 %v3911_v21 }
0x1264   :  { %3913 = vmatprep.subr.bf16.mxu0 %v4138_v2 }
0x1267   :  { %3915 = vmatpush3.bf16.msra.mxu0 %v3914_v16 }
0x1268   :  { %3916 = vmatprep.subr.bf16.mxu0 %v4138_v2 }
0x126b   :  { %3918 = vmatpush3.bf16.msra.mxu0 %v3917_v14 }
0x126c   :  { %3919 = vmatprep.subr.bf16.mxu0 %v4138_v2 }
0x126f   :  { %3921 = vmatpush3.bf16.msra.mxu0 %v3920_v37 }
0x1270   :  { %3922 = vmatprep.subr.bf16.mxu0 %v4138_v2 }
0x1273   :  { %3924 = vmatpush3.bf16.msra.mxu0 %v3923_v19 }
0x1276   :  { %3852 = vmatmul.mubr.f32.vlgmr.msra.gmra.mrb[82].mxu0 %v3258_v24 }
0x1329   :  { %v3171_v22 = vpop.f32.mrb[80].mxu0 }
0x132a   :  { %v3172_v56 = vadd.f32 %v3670_v50, %v3171_v22  ;;  %v3807_v52 = vpop.f32.mrb[81].mxu0 }
0x132c   :  { %v3175_v15 = vmax.f32 %v3172_v56, 0.0 }
0x132e   :  { %v3448_v53 = vmul.f32 %v3676_v62, %v3175_v15 }
0x1330   :  { %3449 = vadd.xlane.f32.xlu0 %v3448_v53 }
0x1349   :  { %v3346_v55 = vpop.f32.mrb[82].mxu0 }
0x134a   :  { %v3347_v49 = vadd.f32 %v3674_v0, %v3346_v55  ;;  %v3853_v3 = vpop.f32.mrb[83].mxu0 }
0x134c   :  { %v3350_v60 = vmax.f32 %v3347_v49, 0.0 }
0x134e   :  { %3887 = vmatmul.mubr.f32.vlgmr.msra.gmra.mrb[90].mxu1 %v3350_v60 }
0x13bd   :  { %v3450_v18 = vpop.xlane.xlu0 %3449 }
0x1421   :  { %v3438_v2 = vpop.f32.mrb[90].mxu1 }
0x1422   :  { %v3439_v58 = vadd.f32 %v3675_v57, %v3438_v2  ;;  %v3888_v27 = vpop.f32.mrb[91].mxu1 }
0x1424   :  { %v3442_v25 = vmax.f32 %v3439_v58, 0.0 }
0x1426   :  { %v3451_v10 = vmul.f32 %v3676_v62, %v3442_v25 }
0x1428   :  { %3452 = vadd.xlane.f32.xlu1 %v3451_v10 }
0x14b5   :  { %v3453_v20 = vpop.xlane.xlu1 %3452 }
0x14b6   :  { %v3454_v51 = vmax.f32 %v3450_v18, %v3453_v20 }
0x14b8   :  { %v3455_v9 = vsub.f32 %v3450_v18, %v3454_v51  ;;  %v3458_v23 = vsub.f32 %v3453_v20, %v3454_v51 }
0x14ba   :  { %v3456_v59 = vmul.f32 1.442695, %v3455_v9  ;;  %v3459_v21 = vmul.f32 1.442695, %v3458_v23 }
0x14bc   :  { %4000 = vpow2.f32 %v3456_v59 }
0x14bd   :  { %4002 = vpow2.f32 %v3459_v21 }
0x14c6   :  { %v4001_v41 = vpop.eup %4000 }
0x14c7   :  { %v4003_v11 = vpop.eup %4002 }
0x14c8   :  { %v3461_v16 = vadd.f32 %v4003_v11, %v4001_v41 }
0x14ca   :  { %4004 = vrcp.f32 %v3461_v16 }
0x14d4   :  { %v4005_v7 = vpop.eup %4004 }
0x14d5   :  { %v3463_v43 = vmul.f32 %v4005_v7, %v4001_v41  ;;  %v3465_v14 = vmul.f32 %v4005_v7, %v4003_v11 }
0x14d7   :  { %v3464_v31 = vmul.f32 %v3463_v43, %v3175_v15  ;;  %v3466_v17 = vmul.f32 %v3465_v14, %v3442_v25 }
0x14d9   :  { %v3467_v37 = vadd.f32 %v3466_v17, %v3464_v31 }
0x14db   :  { %3468 = vst [vmem:[#allocation10] sm:$0xff] %v3467_v37 }
0x14dc   :  { %4106 = shalt.err (!%p4103_p8)
}
0x14dd   :  { %s4107_s17 = scalar_lea.hbm %s4551_s4, 128 }
0x14de   :  { %p4108_p9 = scmp.ne.s32.totalorder %s4551_s4, %s4107_s17  ;;  %p4111_p10 = scmp.lt.u32.totalorder %s4107_s17, %s4551_s4 }
0x14e0   :  { %p4113_p11 = pnand %p4111_p10, %p4108_p9 }
0x14e2   :  { %4116 = shalt.err (!%p4113_p11)
}
0x14e3   :  { %3478 = dma.vmem_to_hbm [thread:$0]  %s3476_s1, 128, %s4551_s4, [#allocation4]  }
0x14e4   :  { %4123 = dma.done.wait [#allocation4], 128  }
0x14e5   :  { %4124 = vsyncadd [#allocation4], 4294967168 }
0x14e6   :  { %3482 = vsyncpa [#allocation3], 1 }
0x14e7   :  { %3483 = vsyncpa [#allocation6], 1 }
0x14e8   :  { %3484 = vsyncpa [#allocation9], 1 }
0x14e9   :  { %3485 = vsyncpa [#allocation4], 1 }

</bundles_post_ra>
